<compile_context>
chip_gen: v7x
topology: tpu7x:2x2x1
jax: 0.10.0
libtpu: 0.0.40
codegen_flags: <defaults>
</compile_context>

<pallas_src>
import numpy as np
import jax
import jax.numpy as jnp
from jax.experimental import pallas as pl
from jax.experimental.pallas import tpu as pltpu


# ----------------------------------------------------------------------------
# Host-side construction of the 1-D interpolation matrices
# ----------------------------------------------------------------------------
def _interp_matrix_1d(in_size: int, out_size: int) -> np.ndarray:
    """(out,in) matrix M s.t. y = M @ x is PyTorch bilinear (per-axis linear)
    interpolation with align_corners=True (nn.Upsample in the module)."""
    if out_size == 1:
        coords = np.zeros((1,), dtype=np.float64)
    else:
        coords = np.arange(out_size, dtype=np.float64) * (in_size - 1) / (out_size - 1)
    i0 = np.clip(np.floor(coords).astype(np.int64), 0, in_size - 1)
    i1 = np.minimum(i0 + 1, in_size - 1)
    frac = coords - i0
    M = np.zeros((out_size, in_size), dtype=np.float64)
    rows = np.arange(out_size)
    np.add.at(M, (rows, i0), 1.0 - frac)
    np.add.at(M, (rows, i1), frac)
    return M.astype(np.float32)


def _vmem_capacity_bytes() -> int:
    """Per-core VMEM capacity; conservative (v7x) fallback if unavailable."""
    try:
        cap = getattr(pltpu.get_tpu_info(), "vmem_capacity_bytes", None)
        if cap:
            return int(cap)
    except Exception:
        pass
    return 64 * 1024 * 1024


def _choose_tile(total: int, step: int, per_unit_bytes: int, budget_bytes: int,
                 *, lane_unit=None, prefer_split: bool = False) -> int:
    """Largest divisor of `total` that is a multiple of `step`, fits the byte
    budget and keeps (tile * lane_unit) % 128 == 0 (unless tile == total).
    prefer_split: pick a proper divisor when possible (>= 2 grid steps)."""
    if total % step != 0:
        return total
    cands = []
    t = step
    while t <= total:
        if (total % t == 0
                and (lane_unit is None or t == total or (t * lane_unit) % 128 == 0)
                and per_unit_bytes * t <= budget_bytes):
            cands.append(t)
        t += step
    if not cands:
        return total          # budget is advisory; fall back to the full extent
    if prefer_split:
        proper = [t for t in cands if t < total]
        if proper:
            return max(proper)
    return max(cands)


# ----------------------------------------------------------------------------
# Kernel: separable resize (H-pass, channel-mix, W-pass) per output-row tile
# ----------------------------------------------------------------------------
def _make_kernel(compute_dtype):
    acc_t = jnp.float32

    def kernel(x_ref, w_ref, b_ref, mh_ref, mwt_ref, o_ref):
        x = x_ref[...]        # (C_in, H, W)        compute_dtype
        w = w_ref[...]        # (C_out, C_in)       compute_dtype
        b = b_ref[...]        # (C_out, 1)          f32
        mh = mh_ref[...]      # (TR, H)             compute_dtype
        mwt = mwt_ref[...]    # (W, Wo)             compute_dtype

        c_out = w.shape[0]
        tr = mh.shape[0]
        wo = mwt.shape[1]

        # H-pass: one flat matmul, MXU N = C_in * W.
        th = jax.lax.dot_general(mh, x, (((1,), (1,)), ((), ())),
                                 preferred_element_type=acc_t)        # (TR, C_in, W)
        # Channel mix (1x1 conv, bias deferred) at the half-pixel stage,
        # contracting C_in directly on the 3-D tensor (no reshape).
        tc = jax.lax.dot_general(w, th.astype(compute_dtype),
                                 (((1,), (1,)), ((), ())),
                                 preferred_element_type=acc_t)        # (C_out, TR, W)
        # W-pass: last matmul; lane dim Wo.
        tw = jax.lax.dot_general(tc.astype(compute_dtype), mwt,
                                 (((2,), (0,)), ((), ())),
                                 preferred_element_type=acc_t)        # (C_out, TR, Wo)
        # Flat lane-dense slab + bias; merge is free when Wo % 128 == 0.
        o_ref[...] = tw.reshape(c_out, tr * wo) + b

    return kernel


# ----------------------------------------------------------------------------
# Wrapper
# ----------------------------------------------------------------------------
def updown_block2d(x, weight, bias, mode: str, enabled: bool = True, *,
                   compute_dtype=jnp.float32, row_tile=None):
    """Forward pass of UpDownBlock2d.  x: (N, C_in, H, W), any float dtype."""
    assert mode in ("up", "down")
    N, C_in, H, W = x.shape
    C_out = weight.shape[0]
    cd = jnp.dtype(compute_dtype)
    itemsize = cd.itemsize

    x32 = jnp.asarray(x).astype(jnp.float32)                 # module does x.float()
    x_c = x32.astype(cd)
    w_c = jnp.asarray(weight, jnp.float32).reshape(C_out, C_in).astype(cd)
    b2d = jnp.asarray(bias, jnp.float32).reshape(C_out, 1)

    if enabled:
        Ho, Wo = (2 * H, 2 * W) if mode == "up" else (H // 2, W // 2)
        Mh = _interp_matrix_1d(H, Ho)                         # (Ho, H)
        Mw = _interp_matrix_1d(W, Wo)                         # (Wo, W)
    else:
        Ho, Wo = H, W
        Mh = np.eye(H, dtype=np.float32)
        Mw = np.eye(W, dtype=np.float32)
    mh_c = jnp.asarray(Mh).astype(cd)                         # (Ho, H)
    mwt_c = jnp.asarray(Mw.T).astype(cd)                      # (W, Wo)

    # ---- VMEM policy (per-generation, with headroom) ------------------------
    vmem_cap = _vmem_capacity_bytes()
    limit_cap = (vmem_cap * 3) // 4       # ~48 MiB on v7x, ~96 MiB on v5e/v6e
    step = 16 if itemsize == 2 else 8     # bf16 tiles: multiples of 16

    x_block_bytes = C_in * H * W * itemsize
    resident = (2 * x_block_bytes                       # double-buffered x slab
                + 2 * (C_out * C_in) * itemsize         # weight
                + 2 * C_out * 4                         # bias
                + 2 * W * Wo * itemsize)                # Mw^T
    tile_budget = max(512 * 1024, int((limit_cap - resident) * 0.6))
    per_row = (2 * C_out * Wo * 4                       # out block (double-buffered)
               + 2 * H * itemsize                       # Mh block
               + (C_in * W + C_out * W + C_out * Wo) * 4)   # live intermediates

    if row_tile is not None:
        TR = int(row_tile)
    else:
        TR = _choose_tile(Ho, step, per_row, tile_budget,
                          lane_unit=Wo, prefer_split=(N == 1))
    assert Ho % TR == 0, "row_tile must divide the output height"
    assert TR == Ho or (TR % 8 == 0 and (TR * Wo) % 128 == 0), \
        "row_tile must be a multiple of 8 with row_tile*Wo a multiple of 128"

    grid = (N, Ho // TR)
    in_specs = [
        pl.BlockSpec((None, C_in, H, W), lambda n, r: (n, 0, 0, 0)),   # x (resident)
        pl.BlockSpec((C_out, C_in),      lambda n, r: (0, 0)),         # weight
        pl.BlockSpec((C_out, 1),         lambda n, r: (0, 0)),         # bias
        pl.BlockSpec((TR, H),            lambda n, r: (r, 0)),         # Mh row tile
        pl.BlockSpec((W, Wo),            lambda n, r: (0, 0)),         # Mw^T
    ]
    # Flattened, lane-dense output: (N, C_out, Ho*Wo); reshaped (free) outside.
    out_specs = pl.BlockSpec((None, C_out, TR * Wo), lambda n, r: (n, 0, r))

    need = resident + per_row * TR
    vmem_limit = int(min(limit_cap, max(32 * 1024 * 1024, int(need * 1.5))))

    flops = 2 * N * (C_in * Ho * H * W            # H-pass
                     + C_out * C_in * Ho * W      # channel mix
                     + C_out * Ho * W * Wo)       # W-pass
    bytes_accessed = (N * C_in * H * W * itemsize + N * C_out * Ho * Wo * 4
                      + (C_out * C_in + Ho * H + W * Wo) * itemsize + C_out * 4)

    out_flat = pl.pallas_call(
        _make_kernel(cd),
        out_shape=jax.ShapeDtypeStruct((N, C_out, Ho * Wo), jnp.float32),
        grid=grid,
        in_specs=in_specs,
        out_specs=out_specs,
        compiler_params=pltpu.CompilerParams(
            dimension_semantics=("parallel", "parallel"),
            vmem_limit_bytes=vmem_limit),
        cost_estimate=pl.CostEstimate(flops=int(flops), transcendentals=0,
                                      bytes_accessed=int(bytes_accessed)),
    )(x_c, w_c, b2d, mh_c, mwt_c)
    return out_flat.reshape(N, C_out, Ho, Wo)


# ----------------------------------------------------------------------------
# Pure-JAX reference (module order: up = resize->conv, down = conv->resize)
# ----------------------------------------------------------------------------
def _reference(x, weight, bias, mode, enabled=True):
    N, C_in, H, W = x.shape
    C_out = weight.shape[0]
    x = jnp.asarray(x).astype(jnp.float32)
    w2d = jnp.asarray(weight, jnp.float32).reshape(C_out, C_in)
    b = jnp.asarray(bias, jnp.float32)
    if enabled:
        Ho, Wo = (2 * H, 2 * W) if mode == "up" else (H // 2, W // 2)
        Mh = jnp.asarray(_interp_matrix_1d(H, Ho))
        Mw = jnp.asarray(_interp_matrix_1d(W, Wo))
    else:
        Mh = jnp.eye(H, dtype=jnp.float32)
        Mw = jnp.eye(W, dtype=jnp.float32)

    def resize(a):   # (N,C,H,W) -> (N,C,Ho,Wo)
        return jnp.einsum("ph,nchw,qw->ncpq", Mh, a, Mw)

    def conv(a):     # 1x1 conv
        return jnp.einsum("oc,nchw->nohw", w2d, a) + b[None, :, None, None]

    return conv(resize(x)) if mode == "up" else resize(conv(x))


if __name__ == "__main__":
    key = jax.random.PRNGKey(0)
    k_x, k_w, k_b, k_x2, k_w2, k_b2 = jax.random.split(key, 6)
    failures = []

    def check(name, out, ref, atol=1e-4, rtol=1e-4):
        out = np.asarray(jax.block_until_ready(out))
        ref = np.asarray(ref)
        if out.shape != ref.shape:
            failures.append(f"{name}: shape {out.shape} vs {ref.shape}")
        elif not np.allclose(out, ref, atol=atol, rtol=rtol):
            failures.append(f"{name}: max|diff|={np.max(np.abs(out - ref)):.3e}")

    # --- primary module-sized small case -------------------------------------
    N, C_in, C_out, H, W = 2, 4, 8, 16, 16
    x = jax.random.normal(k_x, (N, C_in, H, W), dtype=jnp.float32)
    bound = 1.0 / np.sqrt(C_in)                   # Conv2d(c_in, c_out, 1) init range
    wgt = jax.random.uniform(k_w, (C_out, C_in), jnp.float32, -bound, bound)
    b = jax.random.uniform(k_b, (C_out,), jnp.float32, -bound, bound)

    for mode in ("up", "down"):
        check(f"{mode}-16", updown_block2d(x, wgt, b, mode),
              _reference(x, wgt, b, mode))
    check("up-identity", updown_block2d(x, wgt, b, "up", enabled=False),
          _reference(x, wgt, b, "up", enabled=False))
    # bf16 MXU path (f32 accumulation) with a correspondingly looser tolerance.
    check("up-16-bf16",
          updown_block2d(x, wgt, b, "up", compute_dtype=jnp.bfloat16),
          _reference(x, wgt, b, "up"), atol=0.1, rtol=0.1)

    # --- larger case: exercises the row-tiled grid and the N==1 2-tile split --
    N2, C_in2, C_out2, H2, W2 = 1, 4, 16, 64, 64
    x2 = jax.random.normal(k_x2, (N2, C_in2, H2, W2), dtype=jnp.float32)
    bound2 = 1.0 / np.sqrt(C_in2)
    w2 = jax.random.uniform(k_w2, (C_out2, C_in2), jnp.float32, -bound2, bound2)
    b2 = jax.random.uniform(k_b2, (C_out2,), jnp.float32, -bound2, bound2)

    check("up-64-auto", updown_block2d(x2, w2, b2, "up"),
          _reference(x2, w2, b2, "up"))
    check("up-64-tile32", updown_block2d(x2, w2, b2, "up", row_tile=32),
          _reference(x2, w2, b2, "up"))
    check("down-64-auto", updown_block2d(x2, w2, b2, "down"),
          _reference(x2, w2, b2, "down"))

    if failures:
        print("FAILED: " + "; ".join(failures))
    else:
        print("KERNEL_OK")
</pallas_src>

<mosaic_0001>
module attributes {stable_mosaic.version = 11 : i64} {
  func.func @kernel(%arg0: i32, %arg1: i32, %arg2: memref<1x4x16x16xf32, #tpu.memory_space<vmem>>, %arg3: memref<8x4xf32, #tpu.memory_space<vmem>>, %arg4: memref<8x1xf32, #tpu.memory_space<vmem>>, %arg5: memref<32x16xf32, #tpu.memory_space<vmem>>, %arg6: memref<16x32xf32, #tpu.memory_space<vmem>>, %arg7: memref<1x8x1024xf32, #tpu.memory_space<vmem>>) attributes {dimension_semantics = [#tpu.dimension_semantics<parallel>, #tpu.dimension_semantics<parallel>], iteration_bounds = array<i64: 2, 1>, scalar_prefetch = 0 : i64, scratch_operands = 0 : i64, tpu.core_type = #tpu.core_type<tc>, window_params = [{transform_indices = @transform_0, window_bounds = array<i64: 1, 4, 16, 16>}, {pipeline_mode = #tpu.pipeline_mode<synchronous>, transform_indices = @transform_1, window_bounds = array<i64: 8, 4>}, {pipeline_mode = #tpu.pipeline_mode<synchronous>, transform_indices = @transform_2, window_bounds = array<i64: 8, 1>}, {transform_indices = @transform_3, window_bounds = array<i64: 32, 16>}, {pipeline_mode = #tpu.pipeline_mode<synchronous>, transform_indices = @transform_4, window_bounds = array<i64: 16, 32>}, {transform_indices = @transform_5, window_bounds = array<i64: 1, 8, 1024>}]} {
    %c0 = arith.constant 0 : index
    %c0_0 = arith.constant 0 : index
    %c0_1 = arith.constant 0 : index
    %c0_2 = arith.constant 0 : index
    %0 = vector.load %arg2[%c0, %c0_0, %c0_1, %c0_2] : memref<1x4x16x16xf32, #tpu.memory_space<vmem>>, vector<1x4x16x16xf32>
    %1 = vector.shape_cast %0 : vector<1x4x16x16xf32> to vector<4x16x16xf32>
    %c0_3 = arith.constant 0 : index
    %c0_4 = arith.constant 0 : index
    %2 = vector.load %arg3[%c0_3, %c0_4] : memref<8x4xf32, #tpu.memory_space<vmem>>, vector<8x4xf32>
    %c0_5 = arith.constant 0 : index
    %c0_6 = arith.constant 0 : index
    %3 = vector.load %arg4[%c0_5, %c0_6] : memref<8x1xf32, #tpu.memory_space<vmem>>, vector<8x1xf32>
    %c0_7 = arith.constant 0 : index
    %c0_8 = arith.constant 0 : index
    %4 = vector.load %arg5[%c0_7, %c0_8] : memref<32x16xf32, #tpu.memory_space<vmem>>, vector<32x16xf32>
    %c0_9 = arith.constant 0 : index
    %c0_10 = arith.constant 0 : index
    %5 = vector.load %arg6[%c0_9, %c0_10] : memref<16x32xf32, #tpu.memory_space<vmem>>, vector<16x32xf32>
    %cst = arith.constant dense<0.000000e+00> : vector<32x4x16xf32>
    %6 = tpu.matmul %4, %1, %cst {dimension_numbers = #tpu.dot_dimension_numbers<[1], [1], [0], [0, 2], [0, 0, 1, 0, 1, 2], [], []>} : vector<32x16xf32>, vector<4x16x16xf32>, vector<32x4x16xf32> -> vector<32x4x16xf32>
    %cst_11 = arith.constant dense<0.000000e+00> : vector<8x32x16xf32>
    %7 = tpu.matmul %2, %6, %cst_11 {dimension_numbers = #tpu.dot_dimension_numbers<[1], [1], [0], [0, 2], [0, 0, 1, 0, 1, 2], [], []>} : vector<8x4xf32>, vector<32x4x16xf32>, vector<8x32x16xf32> -> vector<8x32x16xf32>
    %cst_12 = arith.constant dense<0.000000e+00> : vector<8x32x32xf32>
    %8 = tpu.matmul %7, %5, %cst_12 {dimension_numbers = #tpu.dot_dimension_numbers<[2], [0], [0, 1], [1], [0, 0, 0, 1, 1, 1], [], []>} : vector<8x32x16xf32>, vector<16x32xf32>, vector<8x32x32xf32> -> vector<8x32x32xf32>
    %9 = vector.shape_cast %8 : vector<8x32x32xf32> to vector<8x1024xf32>
    %10 = vector.broadcast %3 : vector<8x1xf32> to vector<8x1024xf32>
    %11 = arith.addf %9, %10 : vector<8x1024xf32>
    %c0_13 = arith.constant 0 : index
    %c0_14 = arith.constant 0 : index
    %c0_15 = arith.constant 0 : index
    %12 = vector.load %arg7[%c0_13, %c0_14, %c0_15] : memref<1x8x1024xf32, #tpu.memory_space<vmem>>, vector<1x8x1024xf32>
    %13 = vector.shape_cast %12 : vector<1x8x1024xf32> to vector<8x1024xf32>
    %14 = vector.shape_cast %11 : vector<8x1024xf32> to vector<1x8x1024xf32>
    tpu.vector_store %arg7[%c0_13, %c0_14, %c0_15], %14 {strides = array<i32>} : memref<1x8x1024xf32, #tpu.memory_space<vmem>>, vector<1x8x1024xf32>,
    return
  }
  func.func @transform_0(%arg0: i32, %arg1: i32) -> (i32, i32, i32, i32) {
    %c0_i32 = arith.constant 0 : i32
    %c0_i32_0 = arith.constant 0 : i32
    %c0_i32_1 = arith.constant 0 : i32
    %c0_i32_2 = arith.constant 0 : i32
    return %arg0, %c0_i32, %c0_i32_0, %c0_i32_1 : i32, i32, i32, i32
  }
  func.func @transform_1(%arg0: i32, %arg1: i32) -> (i32, i32) {
    %c0_i32 = arith.constant 0 : i32
    %c0_i32_0 = arith.constant 0 : i32
    %c0_i32_1 = arith.constant 0 : i32
    return %c0_i32, %c0_i32_0 : i32, i32
  }
  func.func @transform_2(%arg0: i32, %arg1: i32) -> (i32, i32) {
    %c0_i32 = arith.constant 0 : i32
    %c0_i32_0 = arith.constant 0 : i32
    %c0_i32_1 = arith.constant 0 : i32
    return %c0_i32, %c0_i32_0 : i32, i32
  }
  func.func @transform_3(%arg0: i32, %arg1: i32) -> (i32, i32) {
    %c0_i32 = arith.constant 0 : i32
    %c0_i32_0 = arith.constant 0 : i32
    return %arg1, %c0_i32 : i32, i32
  }
  func.func @transform_4(%arg0: i32, %arg1: i32) -> (i32, i32) {
    %c0_i32 = arith.constant 0 : i32
    %c0_i32_0 = arith.constant 0 : i32
    %c0_i32_1 = arith.constant 0 : i32
    return %c0_i32, %c0_i32_0 : i32, i32
  }
  func.func @transform_5(%arg0: i32, %arg1: i32) -> (i32, i32, i32) {
    %c0_i32 = arith.constant 0 : i32
    %c0_i32_0 = arith.constant 0 : i32
    return %arg0, %c0_i32, %arg1 : i32, i32, i32
  }
}

</mosaic_0001>

<bundles_post_ra>
// kernel: tpu_custom_call.1
= control target key start
LH: loop header
LB: loop body
LE: loop exit
PB: predicated region body
PF: predicated region fallthrough
CT: control target
= control target key end

     0   :  { %10 = vsyncpa [#allocation3], 0  ;;  %s4711_s0 = inlined_call_operand.hbm [shape: f32[2,4,16,16], index: 0, kind: input, shape index: {}]   ;;  %s4712_s1 = inlined_call_operand.vmem [shape: f32[8,4], index: 1, kind: input, shape index: {}]   ;;  %s4713_s2 = inlined_call_operand.vmem [shape: f32[8,1], index: 2, kind: input, shape index: {}]   ;;  %s4714_s3 = inlined_call_operand.vmem [shape: f32[32,16], index: 3, kind: input, shape index: {}]   ;;  %s4715_s4 = inlined_call_operand.vmem [shape: f32[16,32], index: 4, kind: input, shape index: {}]   ;;  %s4716_s5 = inlined_call_operand.hbm [shape: f32[2,8,1024], index: 5, kind: output, shape index: {}]  }
   0x1   :  { %12 = vsyncpa [#allocation3 + $0x1], 0 }
   0x2   :  { %13 = vsyncpa [#allocation4], 0 }
   0x3   :  { %15 = vsyncpa [#allocation4 + $0x1], 0  ;;  %s3581_s18 = smov 0   ;;  %s3583_s19 = smov 0  }
   0x4   :  { %s3585_s20 = smov 0   ;;  %s3587_s21 = smov 0  }
   0x5   :  { %s3589_s22 = smov 0   ;;  %s3591_s23 = smov 0  }
   0x6 LB: > { %s3155_s24 = sadd.s32 4294967295, %s3534_s23   ;;  %s3156_s25 = sadd.s32 4294967294, %s3534_s23   ;;  %s3534_s23 = sphi %s3591_s23, %s21_s23   ;;  %s3530_s22 = sphi %s3589_s22, %s4731_s22   ;;  %s3526_s21 = sphi %s3587_s21, %s4730_s21   ;;  %s3522_s20 = sphi %s3585_s20, %s4729_s20   ;;  %s3518_s19 = sphi %s3583_s19, %s4728_s19   ;;  %s3514_s18 = sphi %s3581_s18, %s4727_s18  }
   0x7   : > { %s33_s26 = sadd.s32 1, %s3530_s22  ;;  %s40_s27 = sadd.s32 1, %s3522_s20 }
   0x8   : > { %p35_p0 = scmp.ge.s32.totalorder %s33_s26, 2  ;;  %p47_p1 = scmp.ne.s32.totalorder %s3522_s20, %s3518_s19 }
   0x9   : > { %p48_p2 = scmp.eq.s32.totalorder %s3534_s23, 0  ;;  %p53_p3 = scmp.ne.s32.totalorder %s3518_s19, %s3514_s18 }
   0xa   : > { %s4733_s26 = smov (%p35_p0, %s33_s26), 0  ;;  %p54_p5 = scmp.eq.s32.totalorder %s3155_s24, 0 }
   0xb   : > { %p3622_p4 = por %p48_p2, %p47_p1  ;;  %s37_s29 = ssub.s32 %s3530_s22, %s4733_s26 }
   0xc   : > { %p168_p6 = scmp.eq.s32.totalorder %s3155_s24, 1  ;;  %p38_p7 = scmp.eq.s32.totalorder %s37_s29, 0 }
   0xd   : > { %p3628_p8 = por %p54_p5, %p53_p3  ;;  %p174_p10 = scmp.eq.s32.totalorder %s3156_s25, 1 }
   0xe   : > { %p3632_p9 = por %p168_p6, %p47_p1  ;;  %p3343_p13 = scmp.lt.s32.totalorder %s3534_s23, 2 }
   0xf   : > { %s3637_s7 = scalar_select %p38_p7, %s3522_s20, %s40_s27  }
  0x10   : > { %s4720_s6 = scalar_select %p3632_p9, 1, 0 }
  0x11   : > { %p3639_p11 = por %p174_p10, %p53_p3  ;;  %s212_s9 = sand.u32 1, %s3522_s20  }
  0x12   : > { %s3160_s10 = sshll.u32 %s212_s9, 6  ;;  %s3217_s11 = sshll.u32 %s3530_s22, 10 }
  0x13   : > { %s4721_s8 = scalar_select %p3639_p11, 1, 0 }
  0x14   : > { %s3650_s14 = scalar_lea.hbm %s4711_s0, %s3217_s11  ;;  %s216_s15 = scalar_lea.vmem [#allocation2], %s3160_s10 }
  0x15   : > { %s223_s16 = sshll.u32 %s216_s15, 4  ;;  %p3656_p0 = pnand %p3343_p13, %p3622_p4  ;;  %s3652_s16 = int_to_ptr.vmem [resolvable:$true] %s223_s16 }
  0x16   : > { %s3661_s24 = scalar_lea.sflag [#allocation3], %s212_s9  ;;  %s3422_s25 = scalar_lea.hbm %s3650_s14, 1024 }
  0x17   : > { %p3423_p2 = scmp.ne.s32.totalorder %s3650_s14, %s3422_s25  ;;  %p3424_p3 = pneg %p3656_p0 }
  0x18   : > { %s3427_s28 = scalar_lea.hbm %s4711_s0, 2048  ;;  %p3428_p4 = scmp.lt.u32.totalorder %s3650_s14, %s4711_s0 }
  0x19   : > { %p3425_p5 = pnand %p3424_p3, %p3423_p2  ;;  %p3429_p7 = scmp.lt.u32.totalorder %s3427_s28, %s3422_s25 }
  0x1a   : > { %p3431_p13 = scmp.lt.u32.totalorder %s3422_s25, %s3650_s14 }
  0x1b   : > { %p3426_p6 = pneg %p3425_p5  ;;  %p3430_p10 = por %p3429_p7, %p3428_p4 }
  0x1d   : > { %p3432_p12 = por %p3431_p13, %p3430_p10 }
  0x1f   : > { %p3433_p1 = pnand %p3432_p12, %p3426_p6 }
  0x21   : > { %3436 = shalt.err (!%p3433_p1)
}
  0x22   : > { %s3437_s9 = scalar_lea.vmem %s3652_s16, 1024  ;;  %s3536_s12 = smov [#allocation2]  }
  0x23   : > { %p3438_p2 = scmp.ne.s32.totalorder %s3652_s16, %s3437_s9  ;;  %s3442_s13 = sshll.u32 %s3536_s12, 4  ;;  %s3443_s13 = int_to_ptr.vmem [resolvable:$false] %s3442_s13 }
  0x24   : > { %s3444_s15 = scalar_lea.vmem %s3443_s13, 2048  ;;  %p3445_p9 = scmp.lt.s32.totalorder %s3652_s16, %s3443_s13 }
  0x25   : > { %p3440_p5 = pnand %p3438_p2, %p3424_p3  ;;  %p3446_p4 = scmp.lt.s32.totalorder %s3444_s15, %s3437_s9 }
  0x27   : > { %p3441_p11 = pneg %p3440_p5  ;;  %p3447_p7 = por %p3446_p4, %p3445_p9 }
  0x29   : > { %p3448_p10 = pnand %p3447_p7, %p3441_p11 }
  0x2b   : > { %3451 = shalt.err (!%p3448_p10)
}
  0x2c   : > { %s3537_s25 = smov 128   ;;  %s3538_s27 = smov 8  }
  0x2d   : > { %3338 = dma.hbm_to_vmem [thread:$0]  (!%p3656_p0), %s3650_s14, 1024, %s3652_s16, %s3661_s24, %s3537_s25, %s3537_s25, %s3538_s27  }
  0x2e   : > { %p231_p12 = scmp.lt.s32.totalorder %s3534_s23, 3  ;;  %p4723_p1 = scmp.ge.s32.totalorder %s3534_s23, 1 }
  0x30   : > { %p232_p3 = pnand %p4723_p1, %p231_p12 }
  0x31   : > { %s3693_s29 = sand.u32 (!%p232_p3), 1, %s3518_s19  }
  0x32   : > { %235 = sbr.rel (%p232_p3) target bundleno = 1560 (0x618), region = 40  ;;  %s3164_s28 = sshll.u32 (!%p232_p3), %s3693_s29, 6 }
  0x33   : > { %s238_s10 = scalar_lea.sflag (!%p232_p3), [#allocation3], %s3693_s29  ;;  %s241_s11 = scalar_lea.vmem (!%p232_p3), [#allocation2], %s3164_s28 }
  0x39   : > { %3505 = dma.done.wait (%p3628_p8), %s238_s10, 1024  }
  0x3a   : > { %3507 = vsyncadd (%p3628_p8), %s238_s10, 4294966272  ;;  %v301_v0 = vlaneseq  ;;  %v3539_v1 = vmov 1983009808   ;;  %v3540_v3 = vmov 1934713408   ;;  %v280_v8 = vld [vmem:[%s241_s11] sm:$0xff] }
  0x3b   : > { %v299_v2 = vunpack.c.l.s4 %v3539_v1  ;;  %v331_v4 = vunpack.c.l.s4 %v3540_v3  ;;  %v281_v9 = vld [vmem:[%s241_s11 + $0x8] sm:$0xff]  ;;  %v282_v10 = vld [vmem:[%s241_s11 + $0x10] sm:$0xff]  ;;  %v283_v12 = vld [vmem:[%s241_s11 + $0x18] sm:$0xff]  ;;  %vm592_vm0 = vcmask 130048   ;;  %s3541_s16 = smov 16   ;;  %s3542_s17 = smov 48  }
  0x3c   : > { %v302_v6 = vshrl.u32 %v301_v0, 7  ;;  %v284_v13 = vld [vmem:[%s241_s11 + $0x20] sm:$0xff]  ;;  %v285_v14 = vld [vmem:[%s241_s11 + $0x28] sm:$0xff]  ;;  %v286_v16 = vld [vmem:[%s241_s11 + $0x30] sm:$0xff]  ;;  %s3543_s24 = smov 32   ;;  %vm595_vm1 = vcmask 261120  }
  0x3d   : > { %v300_v5 = vunpack.c.0.s8 %v299_v2  ;;  %v332_v7 = vunpack.c.0.s8 %v331_v4  ;;  %v287_v17 = vld [vmem:[%s241_s11 + $0x38] sm:$0xff]  ;;  %v296_v18 = vcombine.low %v280_v8, %v284_v13  ;;  %v297_v19 = vcombine.high %v280_v8, %v284_v13  ;;  %s3545_s10 = smov 96   ;;  %s3546_s11 = smov 112  }
  0x3e   : > { %v364_v20 = vcombine.low %v281_v9, %v285_v14  ;;  %v365_v21 = vcombine.high %v281_v9, %v285_v14  ;;  %v312_v22 = vcombine.low %v282_v10, %v286_v16  ;;  %v313_v23 = vcombine.high %v282_v10, %v286_v16  ;;  %s3547_s30 = smov 80   ;;  %s3548_s14 = smov 64  }
  0x3f   : > { %v3703_v11 = vsub.s32 %v300_v5, %v302_v6  ;;  %v3705_v15 = vsub.s32 %v332_v7, %v302_v6  ;;  %v380_v24 = vcombine.low %v283_v12, %v287_v17  ;;  %v381_v25 = vcombine.high %v283_v12, %v287_v17  ;;  %p4724_p9 = scmp.ne.s32.totalorder %s4720_s6, 0  ;;  %s3550_s12 = smov [#allocation5]  }
  0x40   : > { %vm598_vm2 = vcmask 392192   ;;  %vm1168_vm3 = vcmask 523264   ;;  %vm1170_vm4 = vcmask 654336   ;;  %vm1174_vm5 = vcmask 916480   ;;  %s3456_s13 = sshll.u32 %s3550_s12, 4  ;;  %s3457_s13 = int_to_ptr.vmem [resolvable:$false] %s3456_s13 }
  0x41   : > { %v304_v26 = vrot.slane %v296_v18, %v3703_v11  ;;  %v311_v27 = vrot.slane %v297_v19, %v3703_v11  ;;  %v372_v28 = vrot.slane %v364_v20, %v3703_v11  ;;  %v379_v29 = vrot.slane %v365_v21, %v3703_v11  ;;  %s3458_s15 = scalar_lea.vmem %s3457_s13, 2048 }
  0x42   : > { %v320_v30 = vrot.slane %v312_v22, %v3703_v11  ;;  %v327_v31 = vrot.slane %v313_v23, %v3703_v11  ;;  %v388_v32 = vrot.slane %v380_v24, %v3703_v11  ;;  %v395_v33 = vrot.slane %v381_v25, %v3703_v11 }
  0x43   : > { %vm1172_vm6 = vcmask 785408   ;;  %vm1249_vm7 = vcmask 1043456   ;;  %vm1245_vm8 = vcmask 31744  }
  0x44   : > { %v328_v34 = vcombine.low %v304_v26, %v320_v30  ;;  %v329_v35 = vcombine.high %v304_v26, %v320_v30  ;;  %v344_v36 = vcombine.low %v311_v27, %v327_v31  ;;  %v345_v37 = vcombine.high %v311_v27, %v327_v31  ;;  %v290_v30 = vld [vmem:[%s4714_s3] sm:$0xff] }
  0x45   : > { %v396_v38 = vcombine.low %v372_v28, %v388_v32  ;;  %v397_v39 = vcombine.high %v372_v28, %v388_v32  ;;  %v412_v40 = vcombine.low %v379_v29, %v395_v33  ;;  %v413_v41 = vcombine.high %v379_v29, %v395_v33  ;;  %3263 = vmatprep.mubr.msk.f32.mxu0 %vm592_vm0, %v290_v30 }
  0x46   : > { %v336_v42 = vrot.slane %v328_v34, %v3705_v15  ;;  %v343_v43 = vrot.slane %v329_v35, %v3705_v15  ;;  %v352_v44 = vrot.slane %v344_v36, %v3705_v15  ;;  %v359_v45 = vrot.slane %v345_v37, %v3705_v15 }
  0x47   : > { %v404_v46 = vrot.slane %v396_v38, %v3705_v15  ;;  %v411_v47 = vrot.slane %v397_v39, %v3705_v15  ;;  %v420_v48 = vrot.slane %v412_v40, %v3705_v15  ;;  %v427_v49 = vrot.slane %v413_v41, %v3705_v15 }
  0x48   : > { %v432_v50 = vcombine.low %v336_v42, %v343_v43  ;;  %v3166_v51 = vcombine.high %v336_v42, %v343_v43  ;;  %v448_v52 = vcombine.low %v352_v44, %v359_v45  ;;  %v3167_v53 = vcombine.high %v352_v44, %v359_v45 }
  0x49   : > { %v500_v54 = vcombine.low %v404_v46, %v411_v47  ;;  %v3168_v55 = vcombine.high %v404_v46, %v411_v47  ;;  %v516_v56 = vcombine.low %v420_v48, %v427_v49  ;;  %v3169_v57 = vcombine.high %v420_v48, %v427_v49 }
  0x4a   : > { %v439_v58 = vrot.slane %v432_v50, %v3703_v11  ;;  %v447_v59 = vrot.slane %v3166_v51, %v3703_v11  ;;  %v455_v60 = vrot.slane %v448_v52, %v3703_v11  ;;  %v463_v61 = vrot.slane %v3167_v53, %v3703_v11 }
  0x4b   : > { %v507_v62 = vrot.slane %v500_v54, %v3703_v11  ;;  %v515_v63 = vrot.slane %v3168_v55, %v3703_v11  ;;  %v523_v0 = vrot.slane %v516_v56, %v3703_v11  ;;  %v531_v1 = vrot.slane %v3169_v57, %v3703_v11 }
  0x4c   : > { %v464_v2 = vcombine.low %v439_v58, %v447_v59  ;;  %v480_v3 = vcombine.low %v455_v60, %v463_v61  ;;  %v465_v4 = vcombine.high %v439_v58, %v447_v59  ;;  %v481_v5 = vcombine.high %v455_v60, %v463_v61  ;;  %v291_v58 = vld [vmem:[%s4714_s3 + $0x8] sm:$0xff]  ;;  %v292_v59 = vld [vmem:[%s4714_s3 + $0x10] sm:$0xff]  ;;  %v293_v60 = vld [vmem:[%s4714_s3 + $0x18] sm:$0xff] }
  0x4d   : > { %v532_v6 = vcombine.low %v507_v62, %v515_v63  ;;  %v548_v7 = vcombine.low %v523_v0, %v531_v1  ;;  %v533_v8 = vcombine.high %v507_v62, %v515_v63  ;;  %v549_v9 = vcombine.high %v523_v0, %v531_v1 }
  0x4e   : > { %v472_v10 = vrot.slane %v464_v2, %v3705_v15  ;;  %v488_v12 = vrot.slane %v480_v3, %v3705_v15  ;;  %v479_v13 = vrot.slane %v465_v4, %v3705_v15  ;;  %v495_v14 = vrot.slane %v481_v5, %v3705_v15 }
  0x4f   : > { %v540_v16 = vrot.slane %v532_v6, %v3705_v15  ;;  %v556_v17 = vrot.slane %v548_v7, %v3705_v15  ;;  %v547_v18 = vrot.slane %v533_v8, %v3705_v15  ;;  %v563_v19 = vrot.slane %v549_v9, %v3705_v15 }
  0x50   : > { %v497_v20 = vcombine.high %v472_v10, %v488_v12  ;;  %v496_v21 = vcombine.low %v472_v10, %v488_v12  ;;  %v498_v22 = vcombine.low %v479_v13, %v495_v14  ;;  %v499_v23 = vcombine.high %v479_v13, %v495_v14 }
  0x51   : > { %v564_v24 = vcombine.low %v540_v16, %v556_v17  ;;  %v565_v25 = vcombine.high %v540_v16, %v556_v17  ;;  %v566_v26 = vcombine.low %v547_v18, %v563_v19  ;;  %v567_v27 = vcombine.high %v547_v18, %v563_v19 }
  0x52   : > { %v3544_v32 = vmov 0.0  }
  0x53   : > { %v3406_v28 = vpack.i.bf16 %v565_v25, %v497_v20  ;;  %v3416_v29 = vpack.i.bf16 %v567_v27, %v499_v23  ;;  %v3411_v31 = vpack.i.bf16 %v566_v26, %v498_v22  ;;  %v601_v33 = vcombine.low %v3544_v32, %v3544_v32  ;;  %1397 = vmatprep.mubr.f32.mxu1 %v3544_v32 }
  0x55   : > { %3407 = vrot.lane.b32.xlu0 %v3406_v28, %s3541_s16  ;;  %3417 = vrot.lane.b32.xlu1 %v3416_v29, %s3542_s17  ;;  %v608_v34 = vrot.slane %v601_v33, %v3703_v11 }
  0x57   : > { %v609_v35 = vcombine.low %v608_v34, %v608_v34  ;;  %v610_v36 = vcombine.high %v608_v34, %v608_v34 }
  0x59   : > { %3412 = vrot.lane.b32.xlu0 %v3411_v31, %s3543_s24  ;;  %v617_v37 = vrot.slane %v609_v35, %v3705_v15  ;;  %v624_v38 = vrot.slane %v610_v36, %v3705_v15 }
  0x5b   : > { %v626_v39 = vcombine.high %v617_v37, %v617_v37  ;;  %v627_v40 = vcombine.low %v624_v38, %v624_v38  ;;  %v628_v41 = vcombine.high %v624_v38, %v624_v38  ;;  %v625_v61 = vcombine.low %v617_v37, %v617_v37 }
  0x5d   : > { %630 = vrot.lane.b32.xlu1 %v626_v39, %s3541_s16  ;;  %634 = vrot.lane.b32.xlu0 %v627_v40, %s3543_s24 }
  0x61   : > { %638 = vrot.lane.b32.xlu1 %v628_v41, %s3542_s17 }
  0xc7   : > { %v3408_v42 = vpop.permute.xlu0 %3407  ;;  %v3418_v43 = vpop.permute.xlu1 %3417 }
  0xc8   : > { %v3410_v44 = vunpack.i.h.bf16 %v3408_v42  ;;  %v3409_v45 = vunpack.i.l.bf16 %v3408_v42  ;;  %v3420_v47 = vunpack.i.h.bf16 %v3418_v43  ;;  %v3419_v48 = vunpack.i.l.bf16 %v3418_v43 }
  0xca   : > { %v593_v51 = vsel %vm592_vm0, %v496_v21, %v3409_v45  ;;  %v594_v52 = vsel %vm592_vm0, %v564_v24, %v3410_v44 }
  0xcb   : > { %v3413_v46 = vpop.permute.xlu0 %3412 }
  0xcc   : > { %v3415_v49 = vunpack.i.h.bf16 %v3413_v46  ;;  %v3414_v50 = vunpack.i.l.bf16 %v3413_v46 }
  0xce   : > { %v596_v53 = vsel %vm595_vm1, %v593_v51, %v3414_v50  ;;  %v597_v54 = vsel %vm595_vm1, %v594_v52, %v3415_v49 }
  0xcf   : > { %v599_v55 = vsel %vm598_vm2, %v596_v53, %v3419_v48  ;;  %v600_v56 = vsel %vm598_vm2, %v597_v54, %v3420_v47  ;;  %v631_v62 = vpop.permute.xlu1 %630  ;;  %v635_v0 = vpop.permute.xlu0 %634 }
  0xd0   : > { %v3321_v57 = vpack.c.bf16 %v600_v56, %v599_v55  ;;  %v641_v63 = vsel %vm592_vm0, %v625_v61, %v631_v62 }
  0xd1   : > { %v642_v1 = vsel %vm595_vm1, %v641_v63, %v635_v0 }
  0xd2   : > { %3322 = vmatprep.subr.bf16.mxu0 %v3321_v57 }
  0xd3   : > { %3324 = vmatpush3.bf16.msra.mxu0 %v3321_v57  ;;  %v639_v2 = vpop.permute.xlu1 %638 }
  0xd4   : > { %v3777_v3 = vsel %vm598_vm2, %v642_v1, %v639_v2 }
  0xd6   : > { %3264 = vmatmul.mubr.msk.f32.vlgmr.msra.gmra.mrb[0].mxu0 %vm592_vm0, %v291_v58 }
  0xd7   : > { %3266 = vmatprep.mubr.msk.f32.mxu0 %vm592_vm0, %v292_v59 }
  0xda   : > { %3267 = vmatmul.mubr.msk.f32.gmra.mrb[2].mxu0 %vm592_vm0, %v293_v60 }
  0xdb   : > { %1326 = vmatprep.mubr.f32.mxu0 %v3544_v32 }
 0x1a9   : > { %v3265_v4 = vpop.f32.mrb[0].mxu0 }
 0x1aa   : > { %v728_v5 = vadd.f32 %v3265_v4, %v3777_v3  ;;  %v722_v6 = vpop.f32.mrb[1].mxu0 }
 0x1ab   : > { %v723_v8 = vadd.f32 %v722_v6, %v3777_v3 }
 0x1ac   : > { %759 = vrot.lane.b32.xlu1 %v728_v5, %s3545_s10  ;;  %747 = vrot.lane.b32.xlu0 %v728_v5, %s3546_s11 }
 0x1ad   : > { %v3268_v7 = vpop.f32.mrb[2].mxu0 }
 0x1ae   : > { %v732_v9 = vpop.f32.mrb[3].mxu0  ;;  %v3786_v10 = vadd.f32 %v3268_v7, %v3777_v3 }
 0x1af   : > { %v3793_v12 = vadd.f32 %v732_v9, %v3777_v3 }
 0x1b0   : > { %771 = vrot.lane.b32.xlu0 %v728_v5, %s3547_s30  ;;  %745 = vrot.lane.b32.xlu1 %v723_v8, %s3546_s11 }
 0x1b4   : > { %751 = vrot.lane.b32.xlu0 %v3786_v10, %s3546_s11  ;;  %763 = vrot.lane.b32.xlu1 %v3786_v10, %s3545_s10 }
 0x1b8   : > { %775 = vrot.lane.b32.xlu0 %v3786_v10, %s3547_s30  ;;  %749 = vrot.lane.b32.xlu1 %v3793_v12, %s3546_s11 }
 0x1bc   : > { %761 = vrot.lane.b32.xlu0 %v3793_v12, %s3545_s10  ;;  %773 = vrot.lane.b32.xlu1 %v3793_v12, %s3547_s30 }
 0x1c0   : > { %757 = vrot.lane.b32.xlu0 %v723_v8, %s3545_s10  ;;  %769 = vrot.lane.b32.xlu1 %v723_v8, %s3547_s30 }
 0x21e   : > { %v760_v13 = vpop.permute.xlu1 %759  ;;  %v748_v14 = vpop.permute.xlu0 %747 }
 0x21f   : > { %v849_v16 = vcombine.low %v728_v5, %v760_v13  ;;  %v850_v17 = vcombine.high %v728_v5, %v760_v13 }
 0x221   : > { %v857_v22 = vrot.slane %v849_v16, %v3703_v11  ;;  %v864_v23 = vrot.slane %v850_v17, %v3703_v11 }
 0x222   : > { %v772_v18 = vpop.permute.xlu0 %771  ;;  %v746_v19 = vpop.permute.xlu1 %745 }
 0x223   : > { %v865_v20 = vcombine.low %v748_v14, %v772_v18  ;;  %v866_v21 = vcombine.high %v748_v14, %v772_v18 }
 0x225   : > { %v873_v24 = vrot.slane %v865_v20, %v3703_v11  ;;  %v880_v25 = vrot.slane %v866_v21, %v3703_v11 }
 0x226   : > { %v752_v26 = vpop.permute.xlu0 %751  ;;  %v764_v27 = vpop.permute.xlu1 %763 }
 0x227   : > { %v882_v28 = vcombine.high %v857_v22, %v873_v24  ;;  %v898_v29 = vcombine.high %v864_v23, %v880_v25  ;;  %v897_v30 = vcombine.low %v864_v23, %v880_v25  ;;  %v881_v45 = vcombine.low %v857_v22, %v873_v24 }
 0x228   : > { %v985_v61 = vcombine.low %v3786_v10, %v764_v27  ;;  %v986_v62 = vcombine.high %v3786_v10, %v764_v27 }
 0x229   : > { %v3810_v31 = vrot.slane %v898_v29, %v3705_v15  ;;  %v896_v33 = vrot.slane %v882_v28, %v3705_v15  ;;  %v905_v36 = vrot.slane %v897_v30, %v3705_v15  ;;  %v3831_v55 = vrot.slane %v881_v45, %v3705_v15 }
 0x22a   : > { %v776_v34 = vpop.permute.xlu0 %775  ;;  %v750_v35 = vpop.permute.xlu1 %749  ;;  %v993_v6 = vrot.slane %v985_v61, %v3703_v11  ;;  %v1000_v7 = vrot.slane %v986_v62, %v3703_v11 }
 0x22b   : > { %1102 = vrot.lane.b32.xlu0 %v3810_v31, %s3545_s10  ;;  %1086 = vrot.lane.b32.xlu1 %v896_v33, %s3543_s24  ;;  %v1001_v56 = vcombine.low %v752_v26, %v776_v34  ;;  %v1002_v57 = vcombine.high %v752_v26, %v776_v34  ;;  %v913_v58 = vcombine.high %v3831_v55, %v3544_v32 }
 0x22c   : > { %v915_v59 = vcombine.high %v905_v36, %v3544_v32  ;;  %v914_v4 = vcombine.high %v896_v33, %v3544_v32 }
 0x22d   : > { %v1009_v63 = vrot.slane %v1001_v56, %v3703_v11  ;;  %v1016_v0 = vrot.slane %v1002_v57, %v3703_v11 }
 0x22e   : > { %v762_v37 = vpop.permute.xlu0 %761  ;;  %v774_v38 = vpop.permute.xlu1 %773 }
 0x22f   : > { %1094 = vrot.lane.b32.xlu1 %v905_v36, %s3548_s14  ;;  %v917_v1 = vcombine.low %v3793_v12, %v762_v37  ;;  %v933_v2 = vcombine.low %v750_v35, %v774_v38  ;;  %v1034_v9 = vcombine.high %v1000_v7, %v1016_v0  ;;  %v918_v10 = vcombine.high %v3793_v12, %v762_v37 }
 0x230   : > { %v934_v13 = vcombine.high %v750_v35, %v774_v38  ;;  %v1017_v27 = vcombine.low %v993_v6, %v1009_v63  ;;  %v1197_v38 = vcombine.high %v3544_v32, %v3544_v32 }
 0x231   : > { %v925_v14 = vrot.slane %v917_v1, %v3703_v11  ;;  %v941_v16 = vrot.slane %v933_v2, %v3703_v11  ;;  %v1048_v20 = vrot.slane %v1034_v9, %v3705_v15  ;;  %v932_v21 = vrot.slane %v918_v10, %v3703_v11 }
 0x232   : > { %v758_v39 = vpop.permute.xlu0 %757  ;;  %v770_v40 = vpop.permute.xlu1 %769  ;;  %v948_v12 = vrot.slane %v934_v13, %v3703_v11  ;;  %v1025_v37 = vrot.slane %v1017_v27, %v3705_v15 }
 0x233   : > { %v781_v41 = vcombine.low %v723_v8, %v758_v39  ;;  %v782_v42 = vcombine.high %v723_v8, %v758_v39  ;;  %v797_v43 = vcombine.low %v746_v19, %v770_v40  ;;  %v798_v44 = vcombine.high %v746_v19, %v770_v40 }
 0x234   : > { %v1018_v8 = vcombine.high %v993_v6, %v1009_v63  ;;  %v1033_v19 = vcombine.low %v1000_v7, %v1016_v0  ;;  %v950_v22 = vcombine.high %v925_v14, %v941_v16  ;;  %v965_v24 = vcombine.low %v932_v21, %v948_v12 }
 0x235   : > { %v789_v46 = vrot.slane %v781_v41, %v3703_v11  ;;  %v3820_v47 = vrot.slane %v782_v42, %v3703_v11  ;;  %v805_v48 = vrot.slane %v797_v43, %v3703_v11  ;;  %v3824_v49 = vrot.slane %v798_v44, %v3703_v11 }
 0x236   : > { %v1032_v23 = vrot.slane %v1018_v8, %v3705_v15  ;;  %v964_v25 = vrot.slane %v950_v22, %v3705_v15  ;;  %v1041_v26 = vrot.slane %v1033_v19, %v3705_v15  ;;  %v949_v28 = vcombine.low %v925_v14, %v941_v16 }
 0x237   : > { %v814_v50 = vcombine.high %v789_v46, %v805_v48  ;;  %v829_v51 = vcombine.low %v3820_v47, %v3824_v49  ;;  %v813_v52 = vcombine.low %v789_v46, %v805_v48  ;;  %v966_v29 = vcombine.high %v932_v21, %v948_v12 }
 0x238   : > { %v1051_v30 = vcombine.high %v1041_v26, %v3544_v32  ;;  %v973_v33 = vrot.slane %v965_v24, %v3705_v15  ;;  %v1052_v34 = vcombine.high %v1048_v20, %v3544_v32  ;;  %v957_v36 = vrot.slane %v949_v28, %v3705_v15 }
 0x239   : > { %v837_v53 = vrot.slane %v829_v51, %v3705_v15  ;;  %v828_v54 = vrot.slane %v814_v50, %v3705_v15  ;;  %v3839_v60 = vrot.slane %v813_v52, %v3705_v15  ;;  %v980_v35 = vrot.slane %v966_v29, %v3705_v15 }
 0x23a   : > { %v981_v39 = vcombine.high %v957_v36, %v3544_v32  ;;  %v1049_v40 = vcombine.high %v1025_v37, %v3544_v32  ;;  %v1204_v41 = vrot.slane %v1197_v38, %v3703_v11  ;;  %v830_v42 = vcombine.high %v3820_v47, %v3824_v49 }
 0x23b   : > { %1066 = vrot.lane.b32.xlu1 %v837_v53, %s3548_s14  ;;  %1058 = vrot.lane.b32.xlu0 %v828_v54, %s3543_s24  ;;  %v845_v5 = vcombine.high %v3839_v60, %v3544_v32  ;;  %v847_v17 = vcombine.high %v837_v53, %v3544_v32  ;;  %v846_v18 = vcombine.high %v828_v54, %v3544_v32 }
 0x23c   : > { %v982_v43 = vcombine.high %v964_v25, %v3544_v32  ;;  %v1050_v44 = vcombine.high %v1032_v23, %v3544_v32  ;;  %v1205_v45 = vcombine.low %v1204_v41, %v1204_v41  ;;  %v844_v46 = vrot.slane %v830_v42, %v3705_v15 }
 0x23d   : > { %v983_v48 = vcombine.high %v973_v33, %v3544_v32  ;;  %v1206_v47 = vcombine.high %v1204_v41, %v1204_v41  ;;  %v984_v51 = vcombine.high %v980_v35, %v3544_v32  ;;  %v916_v54 = vcombine.high %v3810_v31, %v3544_v32 }
 0x23e   : > { %v1213_v50 = vrot.slane %v1205_v45, %v3705_v15  ;;  %v848_v49 = vcombine.high %v844_v46, %v3544_v32 }
 0x23f   : > { %1082 = vrot.lane.b32.xlu1 %v913_v58, %s3541_s16  ;;  %1098 = vrot.lane.b32.xlu0 %v915_v59, %s3547_s30  ;;  %v1220_v53 = vrot.slane %v1206_v47, %v3705_v15 }
 0x240   : > { %v1222_v52 = vcombine.high %v1213_v50, %v1213_v50  ;;  %v1221_v56 = vcombine.low %v1213_v50, %v1213_v50 }
 0x241   : > { %v1224_v57 = vcombine.high %v1220_v53, %v1220_v53  ;;  %v1223_v58 = vcombine.low %v1220_v53, %v1220_v53 }
 0x243   : > { %1090 = vrot.lane.b32.xlu1 %v914_v4, %s3542_s17  ;;  %1054 = vrot.lane.b32.xlu0 %v845_v5, %s3541_s16 }
 0x247   : > { %1070 = vrot.lane.b32.xlu1 %v847_v17, %s3547_s30  ;;  %1062 = vrot.lane.b32.xlu0 %v846_v18, %s3542_s17 }
 0x24b   : > { %1158 = vrot.lane.b32.xlu1 %v1048_v20, %s3545_s10  ;;  %1142 = vrot.lane.b32.xlu0 %v1032_v23, %s3543_s24 }
 0x24f   : > { %1114 = vrot.lane.b32.xlu1 %v964_v25, %s3543_s24  ;;  %1150 = vrot.lane.b32.xlu0 %v1041_v26, %s3548_s14 }
 0x253   : > { %1154 = vrot.lane.b32.xlu1 %v1051_v30, %s3547_s30  ;;  %1122 = vrot.lane.b32.xlu0 %v973_v33, %s3548_s14 }
 0x257   : > { %1162 = vrot.lane.b32.xlu1 %v1052_v34, %s3546_s11  ;;  %1130 = vrot.lane.b32.xlu0 %v980_v35, %s3545_s10 }
 0x25b   : > { %1110 = vrot.lane.b32.xlu1 %v981_v39, %s3541_s16  ;;  %1138 = vrot.lane.b32.xlu0 %v1049_v40, %s3541_s16 }
 0x25f   : > { %1118 = vrot.lane.b32.xlu1 %v982_v43, %s3542_s17  ;;  %1146 = vrot.lane.b32.xlu0 %v1050_v44, %s3542_s17  ;;  %v288_v43 = vld [vmem:[%s4712_s1] sm:$0xff] }
 0x263   : > { %1074 = vrot.lane.b32.xlu1 %v844_v46, %s3545_s10  ;;  %1126 = vrot.lane.b32.xlu0 %v983_v48, %s3547_s30 }
 0x267   : > { %1078 = vrot.lane.b32.xlu1 %v848_v49, %s3546_s11  ;;  %1134 = vrot.lane.b32.xlu0 %v984_v51, %s3546_s11 }
 0x26b   : > { %1106 = vrot.lane.b32.xlu0 %v916_v54, %s3546_s11  ;;  %1230 = vrot.lane.b32.xlu1 %v1222_v52, %s3547_s30 }
 0x26f   : > { %1226 = vrot.lane.b32.xlu0 %v1221_v56, %s3548_s14  ;;  %1238 = vrot.lane.b32.xlu1 %v1224_v57, %s3546_s11 }
 0x273   : > { %1234 = vrot.lane.b32.xlu0 %v1223_v58, %s3545_s10 }
 0x29d   : > { %v1087_v59 = vpop.permute.xlu1 %1086  ;;  %v1103_v61 = vpop.permute.xlu0 %1102 }
 0x2a1   : > { %v1095_v62 = vpop.permute.xlu1 %1094 }
 0x2ad   : > { %v1059_v63 = vpop.permute.xlu0 %1058  ;;  %v1067_v0 = vpop.permute.xlu1 %1066 }
 0x2b1   : > { %v1099_v1 = vpop.permute.xlu0 %1098  ;;  %v1083_v32 = vpop.permute.xlu1 %1082 }
 0x2b2   : > { %v1176_v21 = vsel %vm592_vm0, %v3831_v55, %v1083_v32 }
 0x2b3   : > { %v1177_v28 = vsel %vm595_vm1, %v1176_v21, %v1087_v59 }
 0x2b5   : > { %v1055_v31 = vpop.permute.xlu0 %1054  ;;  %v1091_v2 = vpop.permute.xlu1 %1090 }
 0x2b6   : > { %v1165_v27 = vsel %vm592_vm0, %v3839_v60, %v1055_v31  ;;  %v1178_v55 = vsel %vm598_vm2, %v1177_v28, %v1091_v2 }
 0x2b7   : > { %v1179_v39 = vsel %vm1168_vm3, %v1178_v55, %v1095_v62 }
 0x2b8   : > { %v1180_v48 = vsel %vm1170_vm4, %v1179_v39, %v1099_v1 }
 0x2b9   : > { %v1063_v4 = vpop.permute.xlu0 %1062  ;;  %v1071_v5 = vpop.permute.xlu1 %1070  ;;  %v1181_v49 = vsel %vm1172_vm6, %v1180_v48, %v1103_v61 }
 0x2bd   : > { %v1143_v6 = vpop.permute.xlu0 %1142  ;;  %v1159_v7 = vpop.permute.xlu1 %1158 }
 0x2c1   : > { %v1151_v8 = vpop.permute.xlu0 %1150  ;;  %v1115_v9 = vpop.permute.xlu1 %1114 }
 0x2c5   : > { %v1123_v10 = vpop.permute.xlu0 %1122  ;;  %v1155_v13 = vpop.permute.xlu1 %1154 }
 0x2c9   : > { %v1131_v14 = vpop.permute.xlu0 %1130  ;;  %v1163_v16 = vpop.permute.xlu1 %1162 }
 0x2cd   : > { %v1139_v17 = vpop.permute.xlu0 %1138  ;;  %v1111_v18 = vpop.permute.xlu1 %1110 }
 0x2ce   : > { %v1190_v19 = vsel %vm592_vm0, %v1025_v37, %v1139_v17  ;;  %v1183_v20 = vsel %vm592_vm0, %v957_v36, %v1111_v18  ;;  %v1166_v37 = vsel %vm595_vm1, %v1165_v27, %v1059_v63 }
 0x2cf   : > { %v1191_v12 = vsel %vm595_vm1, %v1190_v19, %v1143_v6  ;;  %v1184_v23 = vsel %vm595_vm1, %v1183_v20, %v1115_v9  ;;  %v1167_v40 = vsel %vm598_vm2, %v1166_v37, %v1063_v4 }
 0x2d0   : > { %v1169_v44 = vsel %vm1168_vm3, %v1167_v40, %v1067_v0 }
 0x2d1   : > { %v1147_v22 = vpop.permute.xlu0 %1146  ;;  %v1119_v24 = vpop.permute.xlu1 %1118  ;;  %v1171_v50 = vsel %vm1170_vm4, %v1169_v44, %v1071_v5 }
 0x2d2   : > { %v1192_v25 = vsel %vm598_vm2, %v1191_v12, %v1147_v22  ;;  %v1185_v26 = vsel %vm598_vm2, %v1184_v23, %v1119_v24 }
 0x2d3   : > { %v1193_v29 = vsel %vm1168_vm3, %v1192_v25, %v1151_v8  ;;  %v1186_v34 = vsel %vm1168_vm3, %v1185_v26, %v1123_v10 }
 0x2d4   : > { %v1194_v30 = vsel %vm1170_vm4, %v1193_v29, %v1155_v13 }
 0x2d5   : > { %v1127_v33 = vpop.permute.xlu0 %1126  ;;  %v1075_v35 = vpop.permute.xlu1 %1074  ;;  %v1195_v36 = vsel %vm1172_vm6, %v1194_v30, %v1159_v7  ;;  %v295_v7 = vld [vmem:[%s4715_s4 + $0x8] sm:$0xff] }
 0x2d6   : > { %v1187_v60 = vsel %vm1170_vm4, %v1186_v34, %v1127_v33  ;;  %v1196_v38 = vsel %vm1174_vm5, %v1195_v36, %v1163_v16  ;;  %v1173_v51 = vsel %vm1172_vm6, %v1171_v50, %v1075_v35 }
 0x2d7   : > { %3177 = vmatprep.subr.msk.mxu1 %vm1249_vm7, %v1196_v38  ;;  %v1188_v42 = vsel %vm1172_vm6, %v1187_v60, %v1131_v14 }
 0x2d9   : > { %v1135_v41 = vpop.permute.xlu0 %1134  ;;  %v1079_v45 = vpop.permute.xlu1 %1078 }
 0x2da   : > { %v1189_v46 = vsel %vm1174_vm5, %v1188_v42, %v1135_v41  ;;  %v1175_v54 = vsel %vm1174_vm5, %v1173_v51, %v1079_v45 }
 0x2db   : > { %3178 = vmatpush1.msk.msra.mxu1 %vm1249_vm7, %v1189_v46 }
 0x2dc   : > { %3179 = vmatmul.mubr.msk.f32.vlgmr.msra.gmra.mrb[0].mxu1 %vm1245_vm8, %v288_v43 }
 0x2dd   : > { %v1107_v47 = vpop.permute.xlu0 %1106  ;;  %v1231_v53 = vpop.permute.xlu1 %1230 }
 0x2de   : > { %v1182_v52 = vsel %vm1174_vm5, %v1181_v49, %v1107_v47 }
 0x2df   : > { %3174 = vmatprep.subr.msk.mxu0 %vm1249_vm7, %v1182_v52 }
 0x2e0   : > { %3175 = vmatpush1.msk.msra.mxu0 %vm1249_vm7, %v1175_v54 }
 0x2e1   : > { %v1227_v56 = vpop.permute.xlu0 %1226  ;;  %3176 = vmatmul.mubr.msk.f32.vlgmr.msra.gmra.mrb[4].mxu0 %vm1245_vm8, %v288_v43  ;;  %v1239_v58 = vpop.permute.xlu1 %1238 }
 0x2e2   : > { %v1241_v57 = vsel %vm1168_vm3, %v3777_v3, %v1227_v56  ;;  %v294_v3 = vld [vmem:[%s4715_s4] sm:$0xff] }
 0x2e3   : > { %v1242_v59 = vsel %vm1170_vm4, %v1241_v57, %v1231_v53  ;;  %v3325_v8 = vpack.c.bf16 %v295_v7, %v294_v3 }
 0x2e5   : > { %v1235_v61 = vpop.permute.xlu0 %1234  ;;  %3329 = vmatprep.subr.bf16.mxu1 %v3325_v8  ;;  %3326 = vmatprep.subr.bf16.mxu0 %v3325_v8 }
 0x2e6   : > { %v1243_v62 = vsel %vm1172_vm6, %v1242_v59, %v1235_v61  ;;  %3330 = vmatpush3.bf16.msra.mxu1 %v3325_v8  ;;  %3328 = vmatpush3.bf16.msra.mxu0 %v3325_v8 }
 0x2e7   : > { %v1244_v63 = vsel %vm1174_vm5, %v1243_v62, %v1239_v58 }
 0x3af   : > { %v1399_v0 = vpop.f32.mrb[0].mxu1 }
 0x3b0   : > { %v3956_v1 = vadd.f32 %v1399_v0, %v1244_v63  ;;  %v1401_v32 = vpop.f32.mrb[1].mxu1 }
 0x3b1   : > { %v3958_v31 = vadd.f32 %v1401_v32, %v1244_v63 }
 0x3b4   : > { %v1328_v2 = vpop.f32.mrb[4].mxu0 }
 0x3b5   : > { %v3960_v4 = vadd.f32 %v1328_v2, %v1244_v63  ;;  %v1330_v5 = vpop.f32.mrb[5].mxu0 }
 0x3b6   : > { %v3962_v6 = vadd.f32 %v1330_v5, %v1244_v63 }
 0x3b7   : > { %1408 = vrot.lane.b32.xlu1 %v3960_v4, %s3545_s10  ;;  %1405 = vrot.lane.b32.xlu0 %v3960_v4, %s3546_s11 }
 0x3bb   : > { %1414 = vrot.lane.b32.xlu1 %v3960_v4, %s3548_s14  ;;  %1411 = vrot.lane.b32.xlu0 %v3960_v4, %s3547_s30 }
 0x3bf   : > { %1420 = vrot.lane.b32.xlu1 %v3960_v4, %s3543_s24  ;;  %1417 = vrot.lane.b32.xlu0 %v3960_v4, %s3542_s17 }
 0x3c3   : > { %1427 = vrot.lane.b32.xlu1 %v3962_v6, %s3546_s11  ;;  %1423 = vrot.lane.b32.xlu0 %v3960_v4, %s3541_s16 }
 0x3c7   : > { %1433 = vrot.lane.b32.xlu1 %v3962_v6, %s3547_s30  ;;  %1430 = vrot.lane.b32.xlu0 %v3962_v6, %s3545_s10 }
 0x3cb   : > { %1439 = vrot.lane.b32.xlu1 %v3962_v6, %s3542_s17  ;;  %1436 = vrot.lane.b32.xlu0 %v3962_v6, %s3548_s14 }
 0x3cf   : > { %1452 = vrot.lane.b32.xlu1 %v3956_v1, %s3545_s10  ;;  %1449 = vrot.lane.b32.xlu0 %v3956_v1, %s3546_s11 }
 0x3d3   : > { %1458 = vrot.lane.b32.xlu1 %v3956_v1, %s3548_s14  ;;  %1455 = vrot.lane.b32.xlu0 %v3956_v1, %s3547_s30 }
 0x3d7   : > { %1464 = vrot.lane.b32.xlu1 %v3956_v1, %s3543_s24  ;;  %1461 = vrot.lane.b32.xlu0 %v3956_v1, %s3542_s17 }
 0x3db   : > { %1471 = vrot.lane.b32.xlu1 %v3958_v31, %s3546_s11  ;;  %1467 = vrot.lane.b32.xlu0 %v3956_v1, %s3541_s16 }
 0x3df   : > { %1477 = vrot.lane.b32.xlu1 %v3958_v31, %s3547_s30  ;;  %1474 = vrot.lane.b32.xlu0 %v3958_v31, %s3545_s10 }
 0x3e3   : > { %1483 = vrot.lane.b32.xlu1 %v3958_v31, %s3542_s17  ;;  %1480 = vrot.lane.b32.xlu0 %v3958_v31, %s3548_s14 }
 0x3e7   : > { %1489 = vrot.lane.b32.xlu1 %v3958_v31, %s3541_s16  ;;  %1486 = vrot.lane.b32.xlu0 %v3958_v31, %s3543_s24 }
 0x3eb   : > { %1445 = vrot.lane.b32.xlu1 %v3962_v6, %s3541_s16  ;;  %1442 = vrot.lane.b32.xlu0 %v3962_v6, %s3543_s24 }
 0x429   : > { %v1409_v9 = vpop.permute.xlu1 %1408  ;;  %v1406_v10 = vpop.permute.xlu0 %1405 }
 0x42a   : > { %v1492_v19 = vcombine.low %v3960_v4, %v1409_v9  ;;  %v1493_v45 = vcombine.high %v3960_v4, %v1409_v9 }
 0x42c   : > { %v4033_v23 = vrot.slane %v1492_v19, %v3703_v11  ;;  %v4081_v54 = vrot.slane %v1493_v45, %v3703_v11 }
 0x42d   : > { %v1415_v13 = vpop.permute.xlu1 %1414  ;;  %v1412_v14 = vpop.permute.xlu0 %1411 }
 0x42e   : > { %v1508_v16 = vcombine.low %v1406_v10, %v1412_v14  ;;  %v1509_v43 = vcombine.high %v1406_v10, %v1412_v14 }
 0x430   : > { %v4028_v20 = vrot.slane %v1508_v16, %v3703_v11  ;;  %v4075_v49 = vrot.slane %v1509_v43, %v3703_v11 }
 0x431   : > { %v1421_v17 = vpop.permute.xlu1 %1420  ;;  %v1418_v18 = vpop.permute.xlu0 %1417 }
 0x432   : > { %v1524_v21 = vcombine.low %v1415_v13, %v1421_v17  ;;  %v1556_v25 = vcombine.low %v4033_v23, %v4028_v20  ;;  %v1525_v59 = vcombine.high %v1415_v13, %v1421_v17  ;;  %v1572_v63 = vcombine.low %v4081_v54, %v4075_v49 }
 0x434   : > { %v4038_v26 = vrot.slane %v1524_v21, %v3703_v11  ;;  %v4046_v30 = vrot.slane %v1556_v25, %v3705_v15  ;;  %v4110_v10 = vrot.slane %v1525_v59, %v3703_v11 }
 0x435   : > { %v4030_v12 = vpop.permute.xlu1 %1427  ;;  %v1424_v22 = vpop.permute.xlu0 %1423 }
 0x436   : > { %v1540_v24 = vcombine.low %v1418_v18, %v1424_v22  ;;  %v1541_v53 = vcombine.high %v1418_v18, %v1424_v22 }
 0x438   : > { %v4041_v27 = vrot.slane %v1540_v24, %v3703_v11  ;;  %v4096_v32 = vrot.slane %v1541_v53, %v3703_v11  ;;  %v4124_v24 = vrot.slane %v1572_v63, %v3705_v15 }
 0x439   : > { %v1434_v28 = vpop.permute.xlu1 %1433  ;;  %v1431_v29 = vpop.permute.xlu0 %1430 }
 0x43a   : > { %v1588_v55 = vcombine.low %v4038_v26, %v4041_v27  ;;  %v1644_v2 = vcombine.low %v4030_v12, %v1434_v28  ;;  %v1645_v4 = vcombine.high %v4030_v12, %v1434_v28  ;;  %v1628_v5 = vcombine.low %v3962_v6, %v1431_v29 }
 0x43b   : > { %v1629_v13 = vcombine.high %v3962_v6, %v1431_v29  ;;  %v1604_v19 = vcombine.low %v4110_v10, %v4096_v32 }
 0x43c   : > { %v4049_v33 = vrot.slane %v1588_v55, %v3705_v15  ;;  %v4118_v21 = vrot.slane %v1644_v2, %v3703_v11  ;;  %v4121_v12 = vrot.slane %v1628_v5, %v3703_v11  ;;  %v4127_v6 = vrot.slane %v1645_v4, %v3703_v11 }
 0x43d   : > { %v4051_v34 = vpop.permute.xlu1 %1439  ;;  %v4053_v35 = vpop.permute.xlu0 %1436  ;;  %v4137_v29 = vrot.slane %v1629_v13, %v3703_v11 }
 0x43e   : > { %v1620_v36 = vcombine.low %v4046_v30, %v4049_v33 }
 0x440   : > { %3273 = vmatprep.mubr.msk.f32.mxu0 %vm592_vm0, %v1620_v36 }
 0x441   : > { %v4058_v37 = vpop.permute.xlu1 %1452  ;;  %v4060_v60 = vpop.permute.xlu0 %1449 }
 0x442   : > { %v1764_v44 = vcombine.low %v3956_v1, %v4058_v37  ;;  %v1765_v55 = vcombine.high %v3956_v1, %v4058_v37 }
 0x444   : > { %v4078_v51 = vrot.slane %v1764_v44, %v3703_v11  ;;  %v4163_v59 = vrot.slane %v1765_v55, %v3703_v11 }
 0x445   : > { %v1459_v38 = vpop.permute.xlu1 %1458  ;;  %v4062_v39 = vpop.permute.xlu0 %1455 }
 0x446   : > { %v1780_v40 = vcombine.low %v4060_v60, %v4062_v39  ;;  %v1781_v36 = vcombine.high %v4060_v60, %v4062_v39 }
 0x448   : > { %v4070_v46 = vrot.slane %v1780_v40, %v3703_v11  ;;  %v4166_v63 = vrot.slane %v1781_v36, %v3703_v11 }
 0x449   : > { %v1465_v41 = vpop.permute.xlu1 %1464  ;;  %v1462_v42 = vpop.permute.xlu0 %1461 }
 0x44a   : > { %v1796_v48 = vcombine.low %v1459_v38, %v1465_v41  ;;  %v1829_v56 = vcombine.high %v4078_v51, %v4070_v46  ;;  %v1797_v22 = vcombine.high %v1459_v38, %v1465_v41 }
 0x44c   : > { %v4086_v57 = vrot.slane %v1796_v48, %v3703_v11  ;;  %v4102_v3 = vrot.slane %v1829_v56, %v3705_v15  ;;  %v4147_v48 = vrot.slane %v1604_v19, %v3705_v15  ;;  %v4152_v1 = vrot.slane %v1797_v22, %v3703_v11 }
 0x44d   : > { %v4072_v50 = vpop.permute.xlu1 %1471  ;;  %v1468_v47 = vpop.permute.xlu0 %1467  ;;  %v1708_v56 = vcombine.low %v4137_v29, %v4127_v6  ;;  %v1828_v19 = vcombine.low %v4078_v51, %v4070_v46  ;;  %v1844_v22 = vcombine.low %v4163_v59, %v4166_v63 }
 0x44e   : > { %v1812_v52 = vcombine.low %v1462_v42, %v1468_v47  ;;  %v1813_v14 = vcombine.high %v1462_v42, %v1468_v47  ;;  %v1692_v47 = vcombine.low %v4121_v12, %v4118_v21  ;;  %v1624_v36 = vcombine.low %v4124_v24, %v4147_v48 }
 0x44f   : > { %v1716_v51 = vrot.slane %v1708_v56, %v3705_v15 }
 0x450   : > { %v4089_v58 = vrot.slane %v1812_v52, %v3703_v11  ;;  %v4144_v38 = vrot.slane %v1813_v14, %v3703_v11  ;;  %v1700_v46 = vrot.slane %v1692_v47, %v3705_v15  ;;  %v1836_v47 = vrot.slane %v1828_v19, %v3705_v15 }
 0x451   : > { %v1478_v61 = vpop.permute.xlu1 %1477  ;;  %v1475_v62 = vpop.permute.xlu0 %1474  ;;  %v1621_v19 = vcombine.high %v4046_v30, %v4049_v33 }
 0x452   : > { %v1861_v0 = vcombine.high %v4086_v57, %v4089_v58  ;;  %v1916_v8 = vcombine.low %v4072_v50, %v1478_v61  ;;  %v1900_v9 = vcombine.low %v3958_v31, %v1475_v62  ;;  %v1917_v37 = vcombine.high %v4072_v50, %v1478_v61 }
 0x453   : > { %v1901_v60 = vcombine.high %v3958_v31, %v1475_v62  ;;  %v1860_v50 = vcombine.low %v4086_v57, %v4089_v58  ;;  %v1876_v62 = vcombine.low %v4152_v1, %v4144_v38 }
 0x454   : > { %v4105_v7 = vrot.slane %v1861_v0, %v3705_v15  ;;  %v4130_v25 = vrot.slane %v1916_v8, %v3703_v11  ;;  %v4133_v28 = vrot.slane %v1900_v9, %v3703_v11  ;;  %v4183_v58 = vrot.slane %v1917_v37, %v3703_v11 }
 0x455   : > { %v1484_v16 = vpop.permute.xlu1 %1483  ;;  %v1481_v17 = vpop.permute.xlu0 %1480  ;;  %v4186_v13 = vrot.slane %v1901_v60, %v3703_v11 }
 0x456   : > { %v1895_v18 = vcombine.high %v4102_v3, %v4105_v7  ;;  %v1965_v39 = vcombine.high %v4133_v28, %v4130_v25  ;;  %v1964_v37 = vcombine.low %v4133_v28, %v4130_v25 }
 0x457   : > { %v1980_v60 = vcombine.low %v4186_v13, %v4183_v58 }
 0x458   : > { %3294 = vmatprep.mubr.msk.f32.mxu1 %vm592_vm0, %v1895_v18  ;;  %v4189_v14 = vrot.slane %v1965_v39, %v3705_v15 }
 0x459   : > { %v1490_v40 = vpop.permute.xlu1 %1489  ;;  %v1487_v41 = vpop.permute.xlu0 %1486 }
 0x45a   : > { %v1948_v42 = vcombine.low %v1484_v16, %v1490_v40  ;;  %v1949_v43 = vcombine.high %v1484_v16, %v1490_v40  ;;  %v1932_v44 = vcombine.low %v1481_v17, %v1487_v41  ;;  %v1933_v45 = vcombine.high %v1481_v17, %v1487_v41 }
 0x45c   : > { %v1956_v52 = vrot.slane %v1948_v42, %v3703_v11  ;;  %v1940_v53 = vrot.slane %v1932_v44, %v3703_v11  ;;  %v4173_v0 = vrot.slane %v1949_v43, %v3703_v11  ;;  %v4176_v2 = vrot.slane %v1933_v45, %v3703_v11 }
 0x45d   : > { %v1446_v31 = vpop.permute.xlu1 %1445  ;;  %v1443_v61 = vpop.permute.xlu0 %1442  ;;  %v1868_v44 = vrot.slane %v1860_v50, %v3705_v15  ;;  %v1884_v45 = vrot.slane %v1876_v62, %v3705_v15  ;;  %v1972_v62 = vrot.slane %v1964_v37, %v3705_v15 }
 0x45e   : > { %v1997_v4 = vcombine.high %v1940_v53, %v1956_v52  ;;  %v1676_v5 = vcombine.low %v4051_v34, %v1446_v31  ;;  %v1677_v8 = vcombine.high %v4051_v34, %v1446_v31  ;;  %v1660_v9 = vcombine.low %v4053_v35, %v1443_v61 }
 0x45f   : > { %v1661_v57 = vcombine.high %v4053_v35, %v1443_v61  ;;  %v1996_v40 = vcombine.low %v1940_v53, %v1956_v52  ;;  %v2012_v41 = vcombine.low %v4176_v2, %v4173_v0  ;;  %v1852_v53 = vrot.slane %v1844_v22, %v3705_v15 }
 0x460   : > { %v4192_v16 = vrot.slane %v1997_v4, %v3705_v15  ;;  %v4195_v17 = vrot.slane %v1676_v5, %v3703_v11  ;;  %v4198_v34 = vrot.slane %v1677_v8, %v3703_v11  ;;  %v4201_v35 = vrot.slane %v1660_v9, %v3703_v11 }
 0x461   : > { %v4204_v18 = vrot.slane %v1661_v57, %v3703_v11  ;;  %v2004_v56 = vrot.slane %v1996_v40, %v3705_v15  ;;  %v2020_v50 = vrot.slane %v2012_v41, %v3705_v15  ;;  %v1892_v25 = vcombine.low %v1836_v47, %v1868_v44 }
 0x462   : > { %v2031_v55 = vcombine.high %v4189_v14, %v4192_v16  ;;  %v1724_v42 = vcombine.low %v4201_v35, %v4195_v17  ;;  %v1896_v28 = vcombine.low %v1852_v53, %v1884_v45  ;;  %v1988_v4 = vrot.slane %v1980_v60, %v3705_v15  ;;  %v289_v60 = vld [vmem:[%s4713_s2] sm:$0xff] }
 0x463   : > { %v1740_v43 = vcombine.low %v4204_v18, %v4198_v34  ;;  %v1589_v5 = vcombine.high %v4038_v26, %v4041_v27  ;;  %v2028_v8 = vcombine.low %v1972_v62, %v2004_v56  ;;  %v1605_v57 = vcombine.high %v4110_v10, %v4096_v32 }
 0x464   : > { %3295 = vmatmul.mubr.msk.f32.vlgmr.msra.gmra.mrb[2].mxu1 %vm592_vm0, %v2031_v55  ;;  %v1732_v39 = vrot.slane %v1724_v42, %v3705_v15  ;;  %v2032_v9 = vcombine.low %v1988_v4, %v2020_v50  ;;  %v1625_v22 = vcombine.high %v4124_v24, %v4147_v48  ;;  %v1557_v55 = vcombine.high %v4033_v23, %v4028_v20 }
 0x465   : > { %v1748_v52 = vrot.slane %v1740_v43, %v3705_v15  ;;  %3297 = vmatprep.mubr.msk.f32.mxu1 %vm592_vm0, %v1624_v36  ;;  %v1573_v26 = vcombine.high %v4081_v54, %v4075_v49  ;;  %v1603_v27 = vrot.slane %v1589_v5, %v3705_v15  ;;  %v1725_v30 = vcombine.high %v4201_v35, %v4195_v17 }
 0x466   : > { %v1756_v31 = vcombine.low %v1700_v46, %v1732_v39  ;;  %v1741_v33 = vcombine.high %v4204_v18, %v4198_v34  ;;  %v1757_v20 = vcombine.high %v1700_v46, %v1732_v39  ;;  %v1619_v32 = vrot.slane %v1605_v57, %v3705_v15 }
 0x467   : > { %v1760_v61 = vcombine.low %v1716_v51, %v1748_v52  ;;  %v1761_v23 = vcombine.high %v1716_v51, %v1748_v52  ;;  %v1877_v10 = vcombine.high %v4152_v1, %v4144_v38  ;;  %v1893_v49 = vcombine.high %v1836_v47, %v1868_v44 }
 0x468   : > { %3274 = vmatmul.mubr.msk.f32.vlgmr.msra.gmra.mrb[6].mxu0 %vm592_vm0, %v1756_v31  ;;  %v1897_v54 = vcombine.high %v1852_v53, %v1884_v45  ;;  %v1571_v24 = vrot.slane %v1557_v55, %v3705_v15  ;;  %v1693_v48 = vcombine.high %v4121_v12, %v4118_v21  ;;  %v1709_v17 = vcombine.high %v4137_v29, %v4127_v6 }
 0x469   : > { %3298 = vmatmul.mubr.msk.f32.gmra.mrb[4].mxu1 %vm592_vm0, %v1760_v61  ;;  %3276 = vmatprep.mubr.msk.f32.mxu0 %vm592_vm0, %v1892_v25  ;;  %v1587_v34 = vrot.slane %v1573_v26, %v3705_v15  ;;  %v1845_v35 = vcombine.high %v4163_v59, %v4166_v63  ;;  %v2013_v38 = vcombine.high %v4176_v2, %v4173_v0 }
 0x46a   : > { %3300 = vmatprep.mubr.msk.f32.mxu1 %vm592_vm0, %v1896_v28  ;;  %v1739_v21 = vrot.slane %v1725_v30, %v3705_v15  ;;  %v1755_v12 = vrot.slane %v1741_v33, %v3705_v15  ;;  %v2029_v6 = vcombine.high %v1972_v62, %v2004_v56  ;;  %v2033_v29 = vcombine.high %v1988_v4, %v2020_v50 }
 0x46b   : > { %v1891_v1 = vrot.slane %v1877_v10, %v3705_v15  ;;  %v1622_v18 = vcombine.low %v1571_v24, %v1603_v27  ;;  %v1626_v36 = vcombine.low %v1587_v34, %v1619_v32  ;;  %v1707_v40 = vrot.slane %v1693_v48, %v3705_v15 }
 0x46c   : > { %3277 = vmatmul.mubr.msk.f32.gmra.mrb[8].mxu0 %vm592_vm0, %v2028_v8  ;;  %v1723_v59 = vrot.slane %v1709_v17, %v3705_v15  ;;  %v1981_v63 = vcombine.high %v4186_v13, %v4183_v58  ;;  %v1859_v0 = vrot.slane %v1845_v35, %v3705_v15  ;;  %v2027_v2 = vrot.slane %v2013_v38, %v3705_v15 }
 0x46d   : > { %3301 = vmatmul.mubr.msk.f32.gmra.mrb[6].mxu1 %vm592_vm0, %v2032_v9  ;;  %3279 = vmatprep.mubr.msk.f32.mxu0 %vm592_vm0, %v1621_v19  ;;  %v1758_v41 = vcombine.low %v1707_v40, %v1739_v21  ;;  %v1894_v43 = vcombine.low %v4102_v3, %v4105_v7  ;;  %v2030_v13 = vcombine.low %v4189_v14, %v4192_v16  ;;  %v3549_v16 = vmov 0  }
 0x46e   : > { %3303 = vmatprep.mubr.msk.f32.mxu1 %vm592_vm0, %v1625_v22  ;;  %v1762_v42 = vcombine.low %v1723_v59, %v1755_v12  ;;  %v1898_v46 = vcombine.low %v1859_v0, %v1891_v1  ;;  %v1995_v58 = vrot.slane %v1981_v63, %v3705_v15  ;;  %v1623_v44 = vcombine.high %v1571_v24, %v1603_v27 }
 0x46f   : > { %v1627_v45 = vcombine.high %v1587_v34, %v1619_v32  ;;  %v1759_v3 = vcombine.high %v1707_v40, %v1739_v21  ;;  %v1763_v7 = vcombine.high %v1723_v59, %v1755_v12  ;;  %v1899_v37 = vcombine.high %v1859_v0, %v1891_v1  ;;  %3421 = vset.pattern.permute.xlu0 %v3549_v16 }
 0x470   : > { %3280 = vmatmul.mubr.msk.f32.gmra.mrb[10].mxu0 %vm592_vm0, %v1757_v20  ;;  %v2034_v51 = vcombine.low %v1995_v58, %v2027_v2  ;;  %v2035_v14 = vcombine.high %v1995_v58, %v2027_v2  ;;  %3023 = vperm.xlu0 %3421, %v289_v60  }
 0x471   : > { %3304 = vmatmul.mubr.msk.f32.gmra.mrb[8].mxu1 %vm592_vm0, %v1761_v23  ;;  %3282 = vmatprep.mubr.msk.f32.mxu0 %vm592_vm0, %v1893_v49 }
 0x472   : > { %3306 = vmatprep.mubr.msk.f32.mxu1 %vm592_vm0, %v1897_v54 }
 0x474   : > { %3283 = vmatmul.mubr.msk.f32.gmra.mrb[12].mxu0 %vm592_vm0, %v2029_v6 }
 0x475   : > { %3307 = vmatmul.mubr.msk.f32.gmra.mrb[10].mxu1 %vm592_vm0, %v2033_v29  ;;  %3285 = vmatprep.mubr.msk.f32.mxu0 %vm592_vm0, %v1622_v18 }
 0x476   : > { %3309 = vmatprep.mubr.msk.f32.mxu1 %vm592_vm0, %v1626_v36 }
 0x478   : > { %3286 = vmatmul.mubr.msk.f32.gmra.mrb[14].mxu0 %vm592_vm0, %v1758_v41 }
 0x479   : > { %3310 = vmatmul.mubr.msk.f32.gmra.mrb[12].mxu1 %vm592_vm0, %v1762_v42  ;;  %3288 = vmatprep.mubr.msk.f32.mxu0 %vm592_vm0, %v1894_v43 }
 0x47a   : > { %3312 = vmatprep.mubr.msk.f32.mxu1 %vm592_vm0, %v1898_v46 }
 0x47c   : > { %3289 = vmatmul.mubr.msk.f32.gmra.mrb[16].mxu0 %vm592_vm0, %v2030_v13 }
 0x47d   : > { %3313 = vmatmul.mubr.msk.f32.gmra.mrb[14].mxu1 %vm592_vm0, %v2034_v51  ;;  %3291 = vmatprep.mubr.msk.f32.mxu0 %vm592_vm0, %v1623_v44 }
 0x47e   : > { %3315 = vmatprep.mubr.msk.f32.mxu1 %vm592_vm0, %v1627_v45 }
 0x480   : > { %3292 = vmatmul.mubr.msk.f32.gmra.mrb[18].mxu0 %vm592_vm0, %v1759_v3 }
 0x481   : > { %3316 = vmatmul.mubr.msk.f32.gmra.mrb[16].mxu1 %vm592_vm0, %v1763_v7 }
 0x482   : > { %3318 = vmatprep.mubr.msk.f32.mxu1 %vm592_vm0, %v1899_v37 }
 0x485   : > { %3319 = vmatmul.mubr.msk.f32.gmra.mrb[18].mxu1 %vm592_vm0, %v2035_v14 }
 0x537   : > { %v3296_v39 = vpop.f32.mrb[2].mxu1 }
 0x538   : > { %v2268_v52 = vpop.f32.mrb[3].mxu1 }
 0x53b   : > { %v3275_v47 = vpop.f32.mrb[6].mxu0 }
 0x53c   : > { %v3299_v53 = vpop.f32.mrb[4].mxu1  ;;  %v2198_v56 = vpop.f32.mrb[7].mxu0 }
 0x53d   : > { %v2278_v50 = vpop.f32.mrb[5].mxu1 }
 0x53f   : > { %v3278_v31 = vpop.f32.mrb[8].mxu0 }
 0x540   : > { %v3302_v61 = vpop.f32.mrb[6].mxu1  ;;  %v2208_v25 = vpop.f32.mrb[9].mxu0 }
 0x541   : > { %v2288_v28 = vpop.f32.mrb[7].mxu1 }
 0x543   : > { %v4313_v62 = vpop.f32.mrb[10].mxu0 }
 0x544   : > { %v4315_v4 = vpop.f32.mrb[8].mxu1  ;;  %v4317_v5 = vpop.f32.mrb[11].mxu0 }
 0x545   : > { %v4319_v8 = vpop.f32.mrb[9].mxu1 }
 0x547   : > { %v3284_v9 = vpop.f32.mrb[12].mxu0 }
 0x548   : > { %v4321_v57 = vpop.f32.mrb[10].mxu1  ;;  %v2781_v19 = vcombine.low %v3284_v9, %v3296_v39  ;;  %v2782_v22 = vcombine.high %v3284_v9, %v3296_v39  ;;  %v2228_v55 = vpop.f32.mrb[13].mxu0 }
 0x549   : > { %v4323_v26 = vpop.f32.mrb[11].mxu1  ;;  %v2645_v27 = vcombine.low %v2228_v55, %v2268_v52  ;;  %v2646_v30 = vcombine.high %v2228_v55, %v2268_v52 }
 0x54a   : > { %v4326_v33 = vrot.slane %v2781_v19, %v3703_v11  ;;  %v4329_v20 = vrot.slane %v2782_v22, %v3703_v11 }
 0x54b   : > { %v4332_v23 = vrot.slane %v2645_v27, %v3703_v11  ;;  %v4335_v32 = vrot.slane %v2646_v30, %v3703_v11  ;;  %v3287_v10 = vpop.f32.mrb[14].mxu0 }
 0x54c   : > { %v3311_v49 = vpop.f32.mrb[12].mxu1  ;;  %v2493_v54 = vcombine.low %v3275_v47, %v3287_v10  ;;  %v2494_v24 = vcombine.high %v3275_v47, %v3287_v10  ;;  %v2238_v34 = vpop.f32.mrb[15].mxu0 }
 0x54d   : > { %v2525_v48 = vcombine.low %v3299_v53, %v3311_v49  ;;  %v2526_v17 = vcombine.high %v3299_v53, %v3311_v49  ;;  %v2318_v35 = vpop.f32.mrb[13].mxu1  ;;  %v2357_v38 = vcombine.low %v2198_v56, %v2238_v34  ;;  %v2358_v21 = vcombine.high %v2198_v56, %v2238_v34 }
 0x54e   : > { %v2389_v12 = vcombine.low %v2278_v50, %v2318_v35  ;;  %v2390_v6 = vcombine.high %v2278_v50, %v2318_v35  ;;  %v4338_v29 = vrot.slane %v2493_v54, %v3703_v11  ;;  %v4341_v1 = vrot.slane %v2494_v24, %v3703_v11 }
 0x54f   : > { %v4344_v18 = vrot.slane %v2525_v48, %v3703_v11  ;;  %v4347_v36 = vrot.slane %v2526_v17, %v3703_v11  ;;  %v4350_v40 = vrot.slane %v2357_v38, %v3703_v11  ;;  %v4353_v59 = vrot.slane %v2358_v21, %v3703_v11  ;;  %v3290_v2 = vpop.f32.mrb[16].mxu0 }
 0x550   : > { %v4356_v63 = vrot.slane %v2389_v12, %v3703_v11  ;;  %v4359_v0 = vrot.slane %v2390_v6, %v3703_v11  ;;  %v3314_v41 = vpop.f32.mrb[14].mxu1  ;;  %v2765_v42 = vcombine.low %v3278_v31, %v3290_v2  ;;  %v2766_v43 = vcombine.high %v3278_v31, %v3290_v2  ;;  %v2248_v13 = vpop.f32.mrb[17].mxu0 }
 0x551   : > { %v2797_v46 = vcombine.low %v3302_v61, %v3314_v41  ;;  %v2798_v58 = vcombine.high %v3302_v61, %v3314_v41  ;;  %v2328_v51 = vpop.f32.mrb[15].mxu1  ;;  %v2629_v44 = vcombine.low %v2208_v25, %v2248_v13  ;;  %v2630_v45 = vcombine.high %v2208_v25, %v2248_v13 }
 0x552   : > { %v2661_v3 = vcombine.low %v2288_v28, %v2328_v51  ;;  %v2662_v7 = vcombine.high %v2288_v28, %v2328_v51  ;;  %v4362_v37 = vrot.slane %v2765_v42, %v3703_v11  ;;  %v4365_v14 = vrot.slane %v2766_v43, %v3703_v11 }
 0x553   : > { %v4368_v16 = vrot.slane %v2797_v46, %v3703_v11  ;;  %v4371_v60 = vrot.slane %v2798_v58, %v3703_v11  ;;  %v4374_v39 = vrot.slane %v2629_v44, %v3703_v11  ;;  %v4377_v52 = vrot.slane %v2630_v45, %v3703_v11  ;;  %v3293_v56 = vpop.f32.mrb[18].mxu0 }
 0x554   : > { %v4380_v47 = vrot.slane %v2661_v3, %v3703_v11  ;;  %v4383_v53 = vrot.slane %v2662_v7, %v3703_v11  ;;  %v3317_v50 = vpop.f32.mrb[16].mxu1  ;;  %v2829_v31 = vcombine.low %v4362_v37, %v4326_v33  ;;  %v2830_v61 = vcombine.high %v4362_v37, %v4326_v33  ;;  %v2258_v9 = vpop.f32.mrb[19].mxu0 }
 0x555   : > { %v2845_v25 = vcombine.low %v4365_v14, %v4329_v20  ;;  %v2846_v28 = vcombine.high %v4365_v14, %v4329_v20  ;;  %v2338_v19 = vpop.f32.mrb[17].mxu1  ;;  %v2693_v22 = vcombine.low %v4374_v39, %v4332_v23  ;;  %v2694_v55 = vcombine.high %v4374_v39, %v4332_v23 }
 0x556   : > { %v2709_v27 = vcombine.low %v4377_v52, %v4335_v32  ;;  %v2710_v30 = vcombine.high %v4377_v52, %v4335_v32  ;;  %v2509_v10 = vcombine.low %v4313_v62, %v3293_v56  ;;  %v2510_v49 = vcombine.high %v4313_v62, %v3293_v56 }
 0x557   : > { %v2541_v54 = vcombine.low %v4315_v4, %v3317_v50  ;;  %v2542_v24 = vcombine.high %v4315_v4, %v3317_v50  ;;  %v2373_v17 = vcombine.low %v4317_v5, %v2258_v9  ;;  %v2374_v34 = vcombine.high %v4317_v5, %v2258_v9 }
 0x558   : > { %v4406_v48 = vrot.slane %v2710_v30, %v3705_v15  ;;  %v2405_v35 = vcombine.low %v4319_v8, %v2338_v19  ;;  %v3320_v38 = vpop.f32.mrb[18].mxu1  ;;  %v2517_v21 = vrot.slane %v2509_v10, %v3703_v11  ;;  %v2524_v12 = vrot.slane %v2510_v49, %v3703_v11 }
 0x559   : > { %v2549_v62 = vrot.slane %v2541_v54, %v3703_v11  ;;  %v2556_v6 = vrot.slane %v2542_v24, %v3703_v11  ;;  %v2348_v2 = vpop.f32.mrb[19].mxu1  ;;  %v2381_v4 = vrot.slane %v2373_v17, %v3703_v11  ;;  %v4417_v41 = vrot.slane %v2374_v34, %v3703_v11 }
 0x55a   : > { %v2406_v42 = vcombine.high %v4319_v8, %v2338_v19  ;;  %v2413_v5 = vrot.slane %v2405_v35, %v3703_v11  ;;  %v2557_v43 = vcombine.low %v4338_v29, %v2517_v21  ;;  %v2558_v46 = vcombine.high %v4338_v29, %v2517_v21 }
 0x55b   : > { %v2573_v58 = vcombine.low %v4341_v1, %v2524_v12  ;;  %v2574_v13 = vcombine.high %v4341_v1, %v2524_v12  ;;  %v2589_v51 = vcombine.low %v4344_v18, %v2549_v62  ;;  %v2590_v44 = vcombine.high %v4344_v18, %v2549_v62 }
 0x55c   : > { %v2605_v45 = vcombine.low %v4347_v36, %v2556_v6  ;;  %v2606_v3 = vcombine.high %v4347_v36, %v2556_v6  ;;  %v2421_v8 = vcombine.low %v4350_v40, %v2381_v4  ;;  %v2422_v7 = vcombine.high %v4350_v40, %v2381_v4 }
 0x55d   : > { %v2437_v56 = vcombine.low %v4353_v59, %v4417_v41  ;;  %v2438_v29 = vcombine.high %v4353_v59, %v4417_v41  ;;  %v2420_v1 = vrot.slane %v2406_v42, %v3703_v11  ;;  %v2453_v50 = vcombine.low %v4356_v63, %v2413_v5 }
 0x55e   : > { %v2454_v18 = vcombine.high %v4356_v63, %v2413_v5  ;;  %v2813_v9 = vcombine.low %v4321_v57, %v3320_v38  ;;  %v2814_v36 = vcombine.high %v4321_v57, %v3320_v38  ;;  %v2677_v19 = vcombine.low %v4323_v26, %v2348_v2 }
 0x55f   : > { %v2678_v40 = vcombine.high %v4323_v26, %v2348_v2  ;;  %v4443_v30 = vrot.slane %v2573_v58, %v3705_v15  ;;  %v2469_v10 = vcombine.low %v4359_v0, %v2420_v1  ;;  %v2470_v59 = vcombine.high %v4359_v0, %v2420_v1 }
 0x560   : > { %v2821_v49 = vrot.slane %v2813_v9, %v3703_v11  ;;  %v4449_v54 = vrot.slane %v2605_v45, %v3705_v15  ;;  %v2828_v63 = vrot.slane %v2814_v36, %v3703_v11  ;;  %v2685_v57 = vrot.slane %v2677_v19, %v3703_v11 }
 0x561   : > { %v2692_v24 = vrot.slane %v2678_v40, %v3703_v11  ;;  %v4455_v26 = vrot.slane %v2557_v43, %v3705_v15  ;;  %v4462_v35 = vrot.slane %v2589_v51, %v3705_v15  ;;  %v2588_v2 = vrot.slane %v2574_v13, %v3705_v15 }
 0x562   : > { %v2861_v17 = vcombine.low %v4368_v16, %v2821_v49  ;;  %v2862_v34 = vcombine.high %v4368_v16, %v2821_v49  ;;  %v2626_v0 = vcombine.high %v4443_v30, %v4449_v54  ;;  %v2877_v38 = vcombine.low %v4371_v60, %v2828_v63 }
 0x563   : > { %v2878_v21 = vcombine.high %v4371_v60, %v2828_v63  ;;  %v2725_v12 = vcombine.low %v4380_v47, %v2685_v57  ;;  %v2726_v11 = vcombine.high %v4380_v47, %v2685_v57  ;;  %v2741_v62 = vcombine.low %v4383_v53, %v2692_v24 }
 0x564   : > { %v2742_v6 = vcombine.high %v4383_v53, %v2692_v24  ;;  %2938 = vrot.lane.b32.xlu1 %v2626_v0, %s3543_s24  ;;  %v2622_v16 = vcombine.high %v4455_v26, %v4462_v35  ;;  %v2620_v4 = vrot.slane %v2606_v3, %v3705_v15  ;;  %v2572_v41 = vrot.slane %v2558_v46, %v3705_v15 }
 0x565   : > { %v2604_v60 = vrot.slane %v2590_v44, %v3705_v15  ;;  %v2436_v42 = vrot.slane %v2422_v7, %v3705_v15  ;;  %v2468_v53 = vrot.slane %v2454_v18, %v3705_v15  ;;  %v4484_v5 = vrot.slane %v2421_v8, %v3705_v15 }
 0x566   : > { %v4479_v47 = vrot.slane %v2742_v6, %v3705_v15  ;;  %2926 = vrot.lane.b32.xlu0 %v2622_v16, %s3543_s24  ;;  %v4487_v43 = vrot.slane %v2453_v50, %v3705_v15  ;;  %v2627_v58 = vcombine.low %v2588_v2, %v2620_v4  ;;  %v2628_v46 = vcombine.high %v2588_v2, %v2620_v4 }
 0x567   : > { %v2623_v13 = vcombine.low %v2572_v41, %v2604_v60  ;;  %v2624_v51 = vcombine.high %v2572_v41, %v2604_v60  ;;  %v2487_v44 = vcombine.low %v2436_v42, %v2468_v53  ;;  %v2488_v3 = vcombine.high %v2436_v42, %v2468_v53 }
 0x568   : > { %v2486_v45 = vcombine.high %v4484_v5, %v4487_v43  ;;  %v4492_v7 = vrot.slane %v2437_v56, %v3705_v15  ;;  %2942 = vrot.lane.b32.xlu1 %v2627_v58, %s3548_s14  ;;  %v4496_v8 = vrot.slane %v2469_v10, %v3705_v15  ;;  %v4502_v1 = vrot.slane %v2829_v31, %v3705_v15 }
 0x569   : > { %v4505_v50 = vrot.slane %v2861_v17, %v3705_v15  ;;  %v2452_v18 = vrot.slane %v2438_v29, %v3705_v15  ;;  %v2484_v56 = vrot.slane %v2470_v59, %v3705_v15  ;;  %v2844_v9 = vrot.slane %v2830_v61, %v3705_v15 }
 0x56a   : > { %2930 = vrot.lane.b32.xlu0 %v2623_v13, %s3548_s14  ;;  %v2876_v36 = vrot.slane %v2862_v34, %v3705_v15  ;;  %v4519_v31 = vrot.slane %v2693_v22, %v3705_v15  ;;  %v2490_v29 = vcombine.high %v4492_v7, %v4496_v8  ;;  %v4526_v40 = vrot.slane %v2725_v12, %v3705_v15 }
 0x56b   : > { %v2894_v19 = vcombine.high %v4502_v1, %v4505_v50  ;;  %v4532_v33 = vrot.slane %v2845_v25, %v3705_v15  ;;  %v2491_v37 = vcombine.low %v2452_v18, %v2484_v56  ;;  %v2492_v10 = vcombine.high %v2452_v18, %v2484_v56 }
 0x56c   : > { %v2895_v61 = vcombine.low %v2844_v9, %v2876_v36  ;;  %v4535_v22 = vrot.slane %v2877_v38, %v3705_v15  ;;  %2946 = vrot.lane.b32.xlu1 %v2628_v46, %s3545_s10  ;;  %v2758_v59 = vcombine.high %v4519_v31, %v4526_v40  ;;  %v2708_v49 = vrot.slane %v2694_v55, %v3705_v15 }
 0x56d   : > { %v2740_v63 = vrot.slane %v2726_v11, %v3705_v15  ;;  %v2860_v25 = vrot.slane %v2846_v28, %v3705_v15  ;;  %v2892_v24 = vrot.slane %v2878_v21, %v3705_v15  ;;  %v4557_v23 = vrot.slane %v2709_v27, %v3705_v15 }
 0x56e   : > { %2934 = vrot.lane.b32.xlu0 %v2624_v51, %s3545_s10  ;;  %v2898_v57 = vcombine.high %v4532_v33, %v4535_v22  ;;  %v4560_v39 = vrot.slane %v2741_v62, %v3705_v15  ;;  %v2896_v20 = vcombine.high %v2844_v9, %v2876_v36  ;;  %v2763_v14 = vcombine.low %v4406_v48, %v4479_v47 }
 0x56f   : > { %v2759_v55 = vcombine.low %v2708_v49, %v2740_v63  ;;  %v2760_v17 = vcombine.high %v2708_v49, %v2740_v63  ;;  %v2899_v28 = vcombine.low %v2860_v25, %v2892_v24  ;;  %v2764_v0 = vcombine.high %v4406_v48, %v4479_v47 }
 0x570   : > { %v2762_v34 = vcombine.high %v4557_v23, %v4560_v39  ;;  %v2900_v38 = vcombine.high %v2860_v25, %v2892_v24  ;;  %2902 = vrot.lane.b32.xlu1 %v2486_v45, %s3543_s24  ;;  %v2625_v15 = vcombine.low %v4443_v30, %v4449_v54  ;;  %v2621_v32 = vcombine.low %v4455_v26, %v4462_v35  ;;  %v4602_v26 = vpop.permute.xlu0 %3023 }
 0x571   : > { %v2485_v52 = vcombine.low %v4484_v5, %v4487_v43  ;;  %v2489_v27 = vcombine.low %v4492_v7, %v4496_v8  ;;  %v2893_v48 = vcombine.low %v4502_v1, %v4505_v50  ;;  %v2897_v21 = vcombine.low %v4532_v33, %v4535_v22 }
 0x572   : > { %2906 = vrot.lane.b32.xlu0 %v2487_v44, %s3548_s14  ;;  %v2757_v30 = vcombine.low %v4519_v31, %v4526_v40  ;;  %v2761_v54 = vcombine.low %v4557_v23, %v4560_v39 }
 0x574   : > { %2914 = vrot.lane.b32.xlu1 %v2490_v29, %s3543_s24 }
 0x576   : > { %2910 = vrot.lane.b32.xlu0 %v2488_v3, %s3545_s10 }
 0x578   : > { %2918 = vrot.lane.b32.xlu1 %v2491_v37, %s3548_s14 }
 0x57a   : > { %2974 = vrot.lane.b32.xlu0 %v2894_v19, %s3543_s24 }
 0x57c   : > { %2922 = vrot.lane.b32.xlu1 %v2492_v10, %s3545_s10 }
 0x57e   : > { %2978 = vrot.lane.b32.xlu0 %v2895_v61, %s3548_s14 }
 0x580   : > { %2986 = vrot.lane.b32.xlu1 %v2898_v57, %s3543_s24 }
 0x582   : > { %2950 = vrot.lane.b32.xlu0 %v2758_v59, %s3543_s24 }
 0x584   : > { %2990 = vrot.lane.b32.xlu1 %v2899_v28, %s3548_s14 }
 0x586   : > { %2954 = vrot.lane.b32.xlu0 %v2759_v55, %s3548_s14 }
 0x588   : > { %2962 = vrot.lane.b32.xlu1 %v2762_v34, %s3543_s24  ;;  %s4614_s24 = scalar_lea.vmem [#allocation5], %s3164_s28  ;;  %s3218_s28 = sshll.u32 %s3526_s21, 10 }
 0x589   : > { %s3043_s21 = scalar_lea.sflag [#allocation4], %s3693_s29 }
 0x58a   : > { %2958 = vrot.lane.b32.xlu0 %v2760_v17, %s3545_s10 }
 0x58c   : > { %2966 = vrot.lane.b32.xlu1 %v2763_v14, %s3548_s14  ;;  %s4661_s14 = scalar_lea.hbm %s4716_s5, %s3218_s28 }
 0x58e   : > { %2982 = vrot.lane.b32.xlu0 %v2896_v20, %s3545_s10 }
 0x590   : > { %2970 = vrot.lane.b32.xlu1 %v2764_v0, %s3545_s10 }
 0x594   : > { %2994 = vrot.lane.b32.xlu1 %v2900_v38, %s3545_s10  ;;  %s3059_s10 = sshll.u32 %s4614_s24, 4  ;;  %s4663_s10 = int_to_ptr.vmem [resolvable:$true] %s3059_s10 }
 0x595   : > { %s3452_s9 = scalar_lea.vmem %s4663_s10, 1024  ;;  %p3459_p6 = scmp.lt.s32.totalorder %s4663_s10, %s3457_s13 }
 0x596   : > { %p3453_p8 = scmp.ne.s32.totalorder %s4663_s10, %s3452_s9  ;;  %p3460_p13 = scmp.lt.s32.totalorder %s3458_s15, %s3452_s9 }
 0x598   : > { %p3454_p11 = pnand %p3453_p8, %p4724_p9  ;;  %p3461_p2 = por %p3460_p13, %p3459_p6 }
 0x59a   : > { %p3455_p0 = pneg %p3454_p11 }
 0x59c   : > { %p3462_p5 = pnand %p3461_p2, %p3455_p0 }
 0x5d6   : > { %v2939_v35 = vpop.permute.xlu1 %2938 }
 0x5d7   : > { %v3006_v6 = vsel %vm595_vm1, %v2625_v15, %v2939_v35 }
 0x5d8   : > { %v2927_v12 = vpop.permute.xlu0 %2926 }
 0x5d9   : > { %v3003_v16 = vsel %vm595_vm1, %v2621_v32, %v2927_v12 }
 0x5da   : > { %v2943_v11 = vpop.permute.xlu1 %2942 }
 0x5db   : > { %v3007_v2 = vsel %vm1168_vm3, %v3006_v6, %v2943_v11 }
 0x5dc   : > { %v2931_v62 = vpop.permute.xlu0 %2930 }
 0x5dd   : > { %v3004_v41 = vsel %vm1168_vm3, %v3003_v16, %v2931_v62 }
 0x5de   : > { %v2947_v4 = vpop.permute.xlu1 %2946 }
 0x5df   : > { %v3008_v60 = vsel %vm1172_vm6, %v3007_v2, %v2947_v4 }
 0x5e0   : > { %v2935_v42 = vpop.permute.xlu0 %2934  ;;  %v3029_v47 = vadd.f32 %v4602_v26, %v3008_v60 }
 0x5e1   : > { %v3005_v53 = vsel %vm1172_vm6, %v3004_v41, %v2935_v42 }
 0x5e2   : > { %v3028_v5 = vadd.f32 %v4602_v26, %v3005_v53  ;;  %3037 = vst [vmem:[%s4614_s24 + $0x18] sm:$0xff] %v3029_v47  ;;  %v2903_v43 = vpop.permute.xlu1 %2902 }
 0x5e3   : > { %v2997_v13 = vsel %vm595_vm1, %v2485_v52, %v2903_v43 }
 0x5e4   : > { %3036 = vst [vmem:[%s4614_s24 + $0x10] sm:$0xff] %v3028_v5  ;;  %v2907_v58 = vpop.permute.xlu0 %2906 }
 0x5e5   : > { %v2998_v51 = vsel %vm1168_vm3, %v2997_v13, %v2907_v58 }
 0x5e6   : > { %v2915_v46 = vpop.permute.xlu1 %2914 }
 0x5e7   : > { %v3000_v18 = vsel %vm595_vm1, %v2489_v27, %v2915_v46 }
 0x5e8   : > { %v2911_v44 = vpop.permute.xlu0 %2910 }
 0x5e9   : > { %v2999_v45 = vsel %vm1172_vm6, %v2998_v51, %v2911_v44 }
 0x5ea   : > { %v3026_v3 = vadd.f32 %v4602_v26, %v2999_v45  ;;  %v2919_v7 = vpop.permute.xlu1 %2918 }
 0x5eb   : > { %v3001_v56 = vsel %vm1168_vm3, %v3000_v18, %v2919_v7 }
 0x5ec   : > { %3034 = vst [vmem:[%s4614_s24] sm:$0xff] %v3026_v3  ;;  %v2975_v8 = vpop.permute.xlu0 %2974 }
 0x5ed   : > { %v3015_v24 = vsel %vm595_vm1, %v2893_v48, %v2975_v8 }
 0x5ee   : > { %v2923_v9 = vpop.permute.xlu1 %2922 }
 0x5ef   : > { %v3002_v36 = vsel %vm1172_vm6, %v3001_v56, %v2923_v9 }
 0x5f0   : > { %v2979_v31 = vpop.permute.xlu0 %2978  ;;  %v3027_v29 = vadd.f32 %v4602_v26, %v3002_v36 }
 0x5f1   : > { %v3016_v17 = vsel %vm1168_vm3, %v3015_v24, %v2979_v31 }
 0x5f2   : > { %3035 = vst [vmem:[%s4614_s24 + $0x8] sm:$0xff] %v3027_v29  ;;  %v2987_v19 = vpop.permute.xlu1 %2986 }
 0x5f3   : > { %v3018_v23 = vsel %vm595_vm1, %v2897_v21, %v2987_v19 }
 0x5f4   : > { %v2951_v40 = vpop.permute.xlu0 %2950 }
 0x5f5   : > { %v3009_v10 = vsel %vm595_vm1, %v2757_v30, %v2951_v40 }
 0x5f6   : > { %v2991_v37 = vpop.permute.xlu1 %2990 }
 0x5f7   : > { %v3019_v39 = vsel %vm1168_vm3, %v3018_v23, %v2991_v37 }
 0x5f8   : > { %v2955_v61 = vpop.permute.xlu0 %2954 }
 0x5f9   : > { %v3010_v49 = vsel %vm1168_vm3, %v3009_v10, %v2955_v61 }
 0x5fa   : > { %v2963_v59 = vpop.permute.xlu1 %2962 }
 0x5fb   : > { %v3012_v28 = vsel %vm595_vm1, %v2761_v54, %v2963_v59 }
 0x5fc   : > { %v2959_v63 = vpop.permute.xlu0 %2958 }
 0x5fd   : > { %v3011_v25 = vsel %vm1172_vm6, %v3010_v49, %v2959_v63 }
 0x5fe   : > { %v3030_v57 = vadd.f32 %v4602_v26, %v3011_v25  ;;  %v2967_v55 = vpop.permute.xlu1 %2966 }
 0x5ff   : > { %v3013_v1 = vsel %vm1168_vm3, %v3012_v28, %v2967_v55 }
 0x600   : > { %3038 = vst [vmem:[%s4614_s24 + $0x20] sm:$0xff] %v3030_v57  ;;  %v2983_v20 = vpop.permute.xlu0 %2982 }
 0x601   : > { %v3017_v14 = vsel %vm1172_vm6, %v3016_v17, %v2983_v20 }
 0x602   : > { %v3032_v34 = vadd.f32 %v4602_v26, %v3017_v14  ;;  %v2971_v50 = vpop.permute.xlu1 %2970 }
 0x603   : > { %v3014_v0 = vsel %vm1172_vm6, %v3013_v1, %v2971_v50 }
 0x604   : > { %3040 = vst [vmem:[%s4614_s24 + $0x30] sm:$0xff] %v3032_v34  ;;  %v3031_v38 = vadd.f32 %v4602_v26, %v3014_v0 }
 0x606   : > { %3039 = vst [vmem:[%s4614_s24 + $0x28] sm:$0xff] %v3031_v38  ;;  %v2995_v15 = vpop.permute.xlu1 %2994 }
 0x607   : > { %v3020_v32 = vsel %vm1172_vm6, %v3019_v39, %v2995_v15 }
 0x608   : > { %v3033_v52 = vadd.f32 %v4602_v26, %v3020_v32 }
 0x60a   : > { %3041 = vst [vmem:[%s4614_s24 + $0x38] sm:$0xff] %v3033_v52 }
 0x60b   : > { %3465 = shalt.err (!%p3462_p5)
}
 0x60c   : > { %s3466_s29 = scalar_lea.hbm %s4661_s14, 1024  ;;  %s3470_s16 = scalar_lea.hbm %s4716_s5, 2048 }
 0x60d   : > { %p3467_p4 = scmp.ne.s32.totalorder %s4661_s14, %s3466_s29  ;;  %p3471_p12 = scmp.lt.u32.totalorder %s4661_s14, %s4716_s5 }
 0x60e   : > { %p3472_p1 = scmp.lt.u32.totalorder %s3470_s16, %s3466_s29  ;;  %p3474_p8 = scmp.lt.u32.totalorder %s3466_s29, %s4661_s14 }
 0x60f   : > { %p3468_p7 = pnand %p3467_p4, %p4724_p9 }
 0x610   : > { %p3473_p3 = por %p3472_p1, %p3471_p12 }
 0x611   : > { %p3469_p10 = pneg %p3468_p7 }
 0x612   : > { %p3475_p11 = por %p3474_p8, %p3473_p3 }
 0x614   : > { %p3476_p0 = pnand %p3475_p11, %p3469_p10 }
 0x616   : > { %3479 = shalt.err (!%p3476_p0)
}
 0x617   : > { %3333 = dma.vmem_to_hbm [thread:$0]  (%p4724_p9), %s4663_s10, 1024, %s4661_s14, %s3043_s21  }
 0x618 PF: > { %s3071_s28 = sand.u32 1, %s3514_s18   ;;  %p4725_p6 = scmp.ne.s32.totalorder %s4721_s8, 0 }
 0x619   : > { %p4726_p13 = scmp.ge.s32.totalorder %s3534_s23, 2  ;;  %s3072_s11 = scalar_lea.sflag [#allocation4], %s3071_s28 }
 0x61b   : > { %p3340_p2 = pnand %p4726_p13, %p4725_p6 }
 0x61d   : > { %3509 = dma.done.wait (!%p3340_p2), %s3072_s11, 1024  }
 0x61e   : > { %3511 = vsyncadd (!%p3340_p2), %s3072_s11, 4294966272  ;;  %s21_s23 = sadd.s32 1, %s3534_s23   ;;  %s4727_s18 = smov %s3518_s19 }
 0x61f   : > { %p18_p5 = scmp.ge.s32.totalorder %s21_s23, 4   ;;  %s4728_s19 = smov %s3522_s20 }
 0x620   : > { %s4729_s20 = smov %s3637_s7  ;;  %s4730_s21 = smov %s3530_s22 }
 0x621   : > { %s4731_s22 = smov %s4733_s26  ;;  %20 = sbr.rel (!%p18_p5) target bundleno = 6 (0x6), region = 88 }
 0x628   :  { %3077 = vsyncpa [#allocation3], 1 }
 0x629   :  { %3079 = vsyncpa [#allocation3 + $0x1], 1 }
 0x62a   :  { %3080 = vsyncpa [#allocation4], 1 }
 0x62b   :  { %3082 = vsyncpa [#allocation4 + $0x1], 1 }

</bundles_post_ra>
